<compile_context>
chip_gen: v6e
topology: v6e:2x2x1
jax: 0.10.0
libtpu: 0.0.40
codegen_flags: <defaults>
</compile_context>

<pallas_src>
import jax
import jax.numpy as jnp
from jax.experimental import pallas as pl
from jax.experimental.pallas import tpu as pltpu

_LANES = 128


def _silu(x):
    # SiLU with a single EUP transcendental: sigmoid(x) == 0.5 * (1 + tanh(0.5*x)).
    return x * (0.5 * jnp.tanh(0.5 * x) + 0.5)


def _round_up(n, m):
    return ((n + m - 1) // m) * m


def mlp_kernel(x_ref, w_ref, w4_ref, v_ref, o_ref):
    """One batch tile of the grouped MLP.

    x_ref : [G*S, L]            f32   G batch groups (L lanes each) stacked on sublanes
    w_ref : [G*H, 128 + 2*G*H]  bf16  block-diag W1^T | W2^T | W3^T (128-lane aligned)
    w4_ref: [G*A, G*H]          bf16  block-diag W4^T
    v_ref : [G*H, 128]          f32   cols 0..2 = tiled b1,b2,b3 ; col 3 rows 0:G*A = b4
    o_ref : [G*A, L]            f32
    """
    GH = w_ref.shape[0]
    GS = x_ref.shape[0]
    GA = o_ref.shape[0]

    x = x_ref[...].astype(jnp.bfloat16)
    w1 = w_ref[:, 0:GS]
    w2 = w_ref[:, _LANES:_LANES + GH]
    w3 = w_ref[:, _LANES + GH:_LANES + 2 * GH]
    b1 = v_ref[:, 0:1]
    b2 = v_ref[:, 1:2]
    b3 = v_ref[:, 2:3]
    b4 = v_ref[0:GA, 3:4]

    # Layer 1 (S -> H): block-diagonal [G*H, G*S] @ [G*S, L] (cheap: K = G*S).
    h = _silu(jnp.dot(w1, x, preferred_element_type=jnp.float32) + b1)
    # Layers 2/3 (H -> H): full [G*H, G*H] block-diagonal stationary tiles on the MXU.
    h = _silu(jnp.dot(w2, h.astype(jnp.bfloat16),
                      preferred_element_type=jnp.float32) + b2)
    h = _silu(jnp.dot(w3, h.astype(jnp.bfloat16),
                      preferred_element_type=jnp.float32) + b3)
    # Layer 4 (H -> A): block-diagonal [G*A, G*H] @ [G*H, L].
    o_ref[...] = jnp.dot(w4_ref[...], h.astype(jnp.bfloat16),
                         preferred_element_type=jnp.float32) + b4


def _block_diag(wt, G):
    """wt: [out, in] -> [G*out, G*in] with G copies of wt on the diagonal."""
    o, i = wt.shape
    m = jnp.zeros((G * o, G * i), wt.dtype)
    for g in range(G):
        m = m.at[g * o:(g + 1) * o, g * i:(g + 1) * i].set(wt)
    return m


def pack_params(params, G):
    """Pack the 8 weight/bias tensors into 3 small resident slabs for G batch groups."""
    (w1, b1), (w2, b2), (w3, b3), (w4, b4) = params
    S, H = w1.shape
    A = w4.shape[1]
    assert A == 1, "kernel specializes the module default action_size=1"
    assert H % 8 == 0 and G * S <= _LANES
    GH, GS, GA = G * H, G * S, G * A

    # bf16 block-diagonal matmul slab (W1^T | W2^T | W3^T), each region 128-lane aligned.
    wslab = jnp.zeros((GH, _LANES + 2 * GH), jnp.float32)
    wslab = wslab.at[:, 0:GS].set(_block_diag(w1.T, G))
    wslab = wslab.at[:, _LANES:_LANES + GH].set(_block_diag(w2.T, G))
    wslab = wslab.at[:, _LANES + GH:_LANES + 2 * GH].set(_block_diag(w3.T, G))
    wslab = wslab.astype(jnp.bfloat16)

    w4bd = _block_diag(w4.T, G).astype(jnp.bfloat16)               # [GA, GH]

    vec = jnp.zeros((GH, _LANES), jnp.float32)                      # f32 bias slab
    vec = vec.at[:, 0].set(jnp.tile(jnp.ravel(b1), G))
    vec = vec.at[:, 1].set(jnp.tile(jnp.ravel(b2), G))
    vec = vec.at[:, 2].set(jnp.tile(jnp.ravel(b3), G))
    vec = vec.at[0:GA, 3].set(jnp.tile(jnp.ravel(b4), G))
    return wslab, w4bd, vec, S, H, A


def _default_group():
    # 256x256 MXU (v6e / v7x) -> 8 groups of 32; 128x128 MXU (v2..v5e) -> 4 groups.
    try:
        kind = jax.devices()[0].device_kind.lower()
    except Exception:
        return 8
    return 4 if any(t in kind for t in ("v2", "v3", "v4", "v5 lite", "v5e")) else 8


def mymodel_forward(x, params, *, group=None, block_b=8192):
    """x: [B, state_size] f32 -> [B, action_size] f32 (MyModel.forward semantics)."""
    B, S = x.shape
    G = _default_group() if group is None else group
    wslab, w4bd, vec, Sp, H, A = pack_params(params, G)
    assert Sp == S

    # Batch tiling: TB elements per grid step, arranged as G groups of L = TB // G
    # lanes.  Big tiles amortize per-step overhead; for large batches keep >= 2 grid
    # steps so the "parallel" axis can shard across v7x's two TensorCores.
    g128 = G * _LANES
    need = _round_up(B, g128)
    TB = max(g128, (block_b // g128) * g128)
    TB = min(TB, need)
    if need >= 2 * g128:
        TB = min(TB, _round_up((need + 1) // 2, g128))
    Bp = _round_up(B, TB)
    nb = Bp // TB
    L = TB // G

    # Host-side regroup: x[b, s] -> x_g[g*S + s, i*L + l] with b = i*TB + g*L + l.
    # TODO(synk): callers that keep activations in this [features, batch-group] layout
    # avoid the extra transpose/pad HBM passes here and on the output.
    xT = jnp.zeros((S, Bp), jnp.float32).at[:, :B].set(x.T.astype(jnp.float32))
    x_g = xT.reshape(S, nb, G, L).transpose(2, 0, 1, 3).reshape(G * S, nb * L)

    out_g = pl.pallas_call(
        mlp_kernel,
        out_shape=jax.ShapeDtypeStruct((G * A, nb * L), jnp.float32),
        grid=(nb,),
        in_specs=[
            pl.BlockSpec((G * S, L), lambda i: (0, i)),        # batch tile (pipelined)
            pl.BlockSpec(wslab.shape, lambda i: (0, 0)),       # bf16 weights, resident
            pl.BlockSpec(w4bd.shape, lambda i: (0, 0)),        # bf16 W4, resident
            pl.BlockSpec(vec.shape, lambda i: (0, 0)),         # f32 biases, resident
        ],
        out_specs=pl.BlockSpec((G * A, L), lambda i: (0, i)),
        compiler_params=pltpu.CompilerParams(
            dimension_semantics=("parallel",)),
    )(x_g, wslab, w4bd, vec)

    # Un-group and drop the batch padding (equivalent of .view(-1, action_size)).
    y = out_g.reshape(G, nb, L).transpose(1, 0, 2).reshape(Bp)[:B]
    return y.reshape(B, A)


def init_params(key, state_size=4, action_size=1, hidden=32):
    """nn.Linear-style U(-1/sqrt(fan_in), 1/sqrt(fan_in)) init; weights stored [in, out]."""
    dims = [(state_size, hidden), (hidden, hidden), (hidden, hidden), (hidden, action_size)]
    params = []
    for fan_in, fan_out in dims:
        key, kw, kb = jax.random.split(key, 3)
        bound = 1.0 / float(fan_in) ** 0.5
        w = jax.random.uniform(kw, (fan_in, fan_out), jnp.float32, -bound, bound)
        b = jax.random.uniform(kb, (fan_out,), jnp.float32, -bound, bound)
        params.append((w, b))
    return params


def reference_forward(x, params, bf16_matmuls=False):
    h = x
    for i, (w, b) in enumerate(params):
        if bf16_matmuls:
            h = jnp.dot(h.astype(jnp.bfloat16), w.astype(jnp.bfloat16),
                        preferred_element_type=jnp.float32) + jnp.ravel(b)
        else:
            h = jnp.dot(h, w, preferred_element_type=jnp.float32) + jnp.ravel(b)
        if i < len(params) - 1:
            h = _silu(h)
    return h.reshape(-1, params[-1][0].shape[1])


# TODO(synk): select_action (eval-mode argmax helper) is not part of forward() and is omitted.

if __name__ == "__main__":
    key = jax.random.PRNGKey(0)
    k_x, k_p = jax.random.split(key)

    batch, state_size, action_size = 8, 4, 1
    x = jax.random.normal(k_x, (batch, state_size), jnp.float32)
    params = init_params(k_p, state_size=state_size, action_size=action_size)

    y = jax.block_until_ready(mymodel_forward(x, params))
    assert y.shape == (batch, action_size), y.shape

    # Exact-plumbing check: reference that applies the same bf16 rounding to MXU operands.
    y_bf16 = reference_forward(x, params, bf16_matmuls=True)
    assert jnp.allclose(y, y_bf16, atol=1e-4, rtol=1e-4), (y, y_bf16)

    # Sanity check vs. the full-f32 reference (bf16 matmul operands => small deviation).
    y_f32 = reference_forward(x, params)
    assert jnp.allclose(y, y_f32, atol=5e-2, rtol=5e-2), (y, y_f32)

    print("KERNEL_OK")
</pallas_src>

<mosaic_0001>
module attributes {stable_mosaic.version = 11 : i64} {
  func.func @mlp_kernel(%arg0: i32, %arg1: memref<32x128xf32, #tpu.memory_space<vmem>>, %arg2: memref<256x640xbf16, #tpu.memory_space<vmem>>, %arg3: memref<8x256xbf16, #tpu.memory_space<vmem>>, %arg4: memref<256x128xf32, #tpu.memory_space<vmem>>, %arg5: memref<8x128xf32, #tpu.memory_space<vmem>>) attributes {dimension_semantics = [#tpu.dimension_semantics<parallel>], iteration_bounds = array<i64: 1>, scalar_prefetch = 0 : i64, scratch_operands = 0 : i64, tpu.core_type = #tpu.core_type<tc>, window_params = [{transform_indices = @transform_0, window_bounds = array<i64: 32, 128>}, {pipeline_mode = #tpu.pipeline_mode<synchronous>, transform_indices = @transform_1, window_bounds = array<i64: 256, 640>}, {pipeline_mode = #tpu.pipeline_mode<synchronous>, transform_indices = @transform_2, window_bounds = array<i64: 8, 256>}, {pipeline_mode = #tpu.pipeline_mode<synchronous>, transform_indices = @transform_3, window_bounds = array<i64: 256, 128>}, {transform_indices = @transform_4, window_bounds = array<i64: 8, 128>}]} {
    %c0 = arith.constant 0 : index
    %c0_0 = arith.constant 0 : index
    %0 = vector.load %arg1[%c0, %c0_0] : memref<32x128xf32, #tpu.memory_space<vmem>>, vector<32x128xf32>
    %1 = arith.truncf %0 : vector<32x128xf32> to vector<32x128xbf16>
    %c0_1 = arith.constant 0 : index
    %c0_2 = arith.constant 0 : index
    %2 = vector.load %arg2[%c0_1, %c0_2] : memref<256x640xbf16, #tpu.memory_space<vmem>>, vector<256x32xbf16>
    %c0_3 = arith.constant 0 : index
    %c128 = arith.constant 128 : index
    %3 = vector.load %arg2[%c0_3, %c128] : memref<256x640xbf16, #tpu.memory_space<vmem>>, vector<256x256xbf16>
    %c0_4 = arith.constant 0 : index
    %c384 = arith.constant 384 : index
    %4 = vector.load %arg2[%c0_4, %c384] : memref<256x640xbf16, #tpu.memory_space<vmem>>, vector<256x256xbf16>
    %c0_5 = arith.constant 0 : index
    %c0_6 = arith.constant 0 : index
    %5 = vector.load %arg4[%c0_5, %c0_6] : memref<256x128xf32, #tpu.memory_space<vmem>>, vector<256x1xf32>
    %c0_7 = arith.constant 0 : index
    %c1 = arith.constant 1 : index
    %6 = vector.load %arg4[%c0_7, %c1] : memref<256x128xf32, #tpu.memory_space<vmem>>, vector<256x1xf32>
    %c0_8 = arith.constant 0 : index
    %c2 = arith.constant 2 : index
    %7 = vector.load %arg4[%c0_8, %c2] : memref<256x128xf32, #tpu.memory_space<vmem>>, vector<256x1xf32>
    %c0_9 = arith.constant 0 : index
    %c3 = arith.constant 3 : index
    %8 = vector.load %arg4[%c0_9, %c3] : memref<256x128xf32, #tpu.memory_space<vmem>>, vector<8x1xf32>
    %cst = arith.constant dense<0.000000e+00> : vector<256x128xf32>
    %9 = tpu.matmul %2, %1, %cst {dimension_numbers = #tpu.dot_dimension_numbers<[1], [0], [0], [1], [0, 0, 1, 1], [], []>} : vector<256x32xbf16>, vector<32x128xbf16>, vector<256x128xf32> -> vector<256x128xf32>
    %10 = vector.broadcast %5 : vector<256x1xf32> to vector<256x128xf32>
    %11 = arith.addf %9, %10 : vector<256x128xf32>
    %cst_10 = arith.constant 5.000000e-01 : f32
    %12 = vector.broadcast %cst_10 : f32 to vector<256x128xf32>
    %13 = arith.mulf %12, %11 : vector<256x128xf32>
    %14 = math.tanh %13 : vector<256x128xf32>
    %cst_11 = arith.constant 5.000000e-01 : f32
    %15 = vector.broadcast %cst_11 : f32 to vector<256x128xf32>
    %16 = arith.mulf %15, %14 : vector<256x128xf32>
    %cst_12 = arith.constant 5.000000e-01 : f32
    %17 = vector.broadcast %cst_12 : f32 to vector<256x128xf32>
    %18 = arith.addf %16, %17 : vector<256x128xf32>
    %19 = arith.mulf %11, %18 : vector<256x128xf32>
    %20 = arith.truncf %19 : vector<256x128xf32> to vector<256x128xbf16>
    %cst_13 = arith.constant dense<0.000000e+00> : vector<256x128xf32>
    %21 = tpu.matmul %3, %20, %cst_13 {dimension_numbers = #tpu.dot_dimension_numbers<[1], [0], [0], [1], [0, 0, 1, 1], [], []>} : vector<256x256xbf16>, vector<256x128xbf16>, vector<256x128xf32> -> vector<256x128xf32>
    %22 = vector.broadcast %6 : vector<256x1xf32> to vector<256x128xf32>
    %23 = arith.addf %21, %22 : vector<256x128xf32>
    %cst_14 = arith.constant 5.000000e-01 : f32
    %24 = vector.broadcast %cst_14 : f32 to vector<256x128xf32>
    %25 = arith.mulf %24, %23 : vector<256x128xf32>
    %26 = math.tanh %25 : vector<256x128xf32>
    %cst_15 = arith.constant 5.000000e-01 : f32
    %27 = vector.broadcast %cst_15 : f32 to vector<256x128xf32>
    %28 = arith.mulf %27, %26 : vector<256x128xf32>
    %cst_16 = arith.constant 5.000000e-01 : f32
    %29 = vector.broadcast %cst_16 : f32 to vector<256x128xf32>
    %30 = arith.addf %28, %29 : vector<256x128xf32>
    %31 = arith.mulf %23, %30 : vector<256x128xf32>
    %32 = arith.truncf %31 : vector<256x128xf32> to vector<256x128xbf16>
    %cst_17 = arith.constant dense<0.000000e+00> : vector<256x128xf32>
    %33 = tpu.matmul %4, %32, %cst_17 {dimension_numbers = #tpu.dot_dimension_numbers<[1], [0], [0], [1], [0, 0, 1, 1], [], []>} : vector<256x256xbf16>, vector<256x128xbf16>, vector<256x128xf32> -> vector<256x128xf32>
    %34 = vector.broadcast %7 : vector<256x1xf32> to vector<256x128xf32>
    %35 = arith.addf %33, %34 : vector<256x128xf32>
    %cst_18 = arith.constant 5.000000e-01 : f32
    %36 = vector.broadcast %cst_18 : f32 to vector<256x128xf32>
    %37 = arith.mulf %36, %35 : vector<256x128xf32>
    %38 = math.tanh %37 : vector<256x128xf32>
    %cst_19 = arith.constant 5.000000e-01 : f32
    %39 = vector.broadcast %cst_19 : f32 to vector<256x128xf32>
    %40 = arith.mulf %39, %38 : vector<256x128xf32>
    %cst_20 = arith.constant 5.000000e-01 : f32
    %41 = vector.broadcast %cst_20 : f32 to vector<256x128xf32>
    %42 = arith.addf %40, %41 : vector<256x128xf32>
    %43 = arith.mulf %35, %42 : vector<256x128xf32>
    %c0_21 = arith.constant 0 : index
    %c0_22 = arith.constant 0 : index
    %44 = vector.load %arg3[%c0_21, %c0_22] : memref<8x256xbf16, #tpu.memory_space<vmem>>, vector<8x256xbf16>
    %45 = arith.truncf %43 : vector<256x128xf32> to vector<256x128xbf16>
    %cst_23 = arith.constant dense<0.000000e+00> : vector<8x128xf32>
    %46 = tpu.matmul %44, %45, %cst_23 {dimension_numbers = #tpu.dot_dimension_numbers<[1], [0], [0], [1], [0, 0, 1, 1], [], []>} : vector<8x256xbf16>, vector<256x128xbf16>, vector<8x128xf32> -> vector<8x128xf32>
    %47 = vector.broadcast %8 : vector<8x1xf32> to vector<8x128xf32>
    %48 = arith.addf %46, %47 : vector<8x128xf32>
    %c0_24 = arith.constant 0 : index
    %c0_25 = arith.constant 0 : index
    %49 = vector.load %arg5[%c0_24, %c0_25] : memref<8x128xf32, #tpu.memory_space<vmem>>, vector<8x128xf32>
    tpu.vector_store %arg5[%c0_24, %c0_25], %48 {strides = array<i32>} : memref<8x128xf32, #tpu.memory_space<vmem>>, vector<8x128xf32>,
    return
  }
  func.func @transform_0(%arg0: i32) -> (i32, i32) {
    %c0_i32 = arith.constant 0 : i32
    %c0_i32_0 = arith.constant 0 : i32
    return %c0_i32, %arg0 : i32, i32
  }
  func.func @transform_1(%arg0: i32) -> (i32, i32) {
    %c0_i32 = arith.constant 0 : i32
    %c0_i32_0 = arith.constant 0 : i32
    %c0_i32_1 = arith.constant 0 : i32
    return %c0_i32, %c0_i32_0 : i32, i32
  }
  func.func @transform_2(%arg0: i32) -> (i32, i32) {
    %c0_i32 = arith.constant 0 : i32
    %c0_i32_0 = arith.constant 0 : i32
    %c0_i32_1 = arith.constant 0 : i32
    return %c0_i32, %c0_i32_0 : i32, i32
  }
  func.func @transform_3(%arg0: i32) -> (i32, i32) {
    %c0_i32 = arith.constant 0 : i32
    %c0_i32_0 = arith.constant 0 : i32
    %c0_i32_1 = arith.constant 0 : i32
    return %c0_i32, %c0_i32_0 : i32, i32
  }
  func.func @transform_4(%arg0: i32) -> (i32, i32) {
    %c0_i32 = arith.constant 0 : i32
    %c0_i32_0 = arith.constant 0 : i32
    return %c0_i32, %arg0 : i32, i32
  }
}

</mosaic_0001>

<bundles_post_ra>
// kernel: tpu_custom_call.1
= control target key start
LH: loop header
LB: loop body
LE: loop exit
PB: predicated region body
PF: predicated region fallthrough
CT: control target
= control target key end

     0   :  { %9 = vsyncpa [#allocation3], 0  ;;  %s4010_s0 = inlined_call_operand.hbm [shape: f32[32,128], index: 0, kind: input, shape index: {}]   ;;  %s4011_s1 = inlined_call_operand.hbm [shape: bf16[256,640], index: 1, kind: input, shape index: {}]   ;;  %s4012_s2 = inlined_call_operand.hbm [shape: bf16[8,256], index: 2, kind: input, shape index: {}]   ;;  %s4013_s3 = inlined_call_operand.hbm [shape: f32[256,128], index: 3, kind: input, shape index: {}]   ;;  %s4014_s4 = inlined_call_operand.hbm [shape: f32[8,128], index: 4, kind: output, shape index: {}]  }
   0x1   :  { %10 = vsyncpa [#allocation6], 0 }
   0x2   :  { %11 = vsyncpa [#allocation9], 0 }
   0x3   :  { %12 = vsyncpa [#allocation4], 0  ;;  %s3022_s15 = smov [#allocation5]  }
   0x4   :  { %s30_s16 = sshll.u32 %s3022_s15, 4  ;;  %s31_s16 = int_to_ptr.vmem [resolvable:$true] %s30_s16 }
   0x5   :  { %s2922_s17 = scalar_lea.vmem %s31_s16, 10240  ;;  %p2927_p1 = scmp.lt.s32.totalorder %s31_s16, %s31_s16 }
   0x6   :  { %p2923_p0 = scmp.ne.s32.totalorder %s31_s16, %s2922_s17  ;;  %p2928_p2 = scmp.lt.s32.totalorder %s2922_s17, %s2922_s17 }
   0x8   :  { %p2929_p3 = por %p2928_p2, %p2927_p1 }
   0xa   :  { %p2930_p4 = pnand %p2929_p3, %p2923_p0 }
   0xc   :  { %2933 = shalt.err (!%p2930_p4)
}
   0xd   :  { %s3023_s18 = smov 320   ;;  %s3024_s19 = smov 20  }
   0xe   :  { %36 = dma.hbm_to_vmem [thread:$0]  %s4011_s1, 10240, %s31_s16, [#allocation6], %s3023_s18, %s3023_s18, %s3024_s19  }
   0xf   :  { %s3025_s22 = smov [#allocation2]  }
  0x10   :  { %s18_s23 = sshll.u32 %s3025_s22, 4  ;;  %s19_s23 = int_to_ptr.vmem [resolvable:$true] %s18_s23 }
  0x11   :  { %s2942_s24 = scalar_lea.vmem %s19_s23, 512  ;;  %p2947_p6 = scmp.lt.s32.totalorder %s19_s23, %s19_s23 }
  0x12   :  { %p2943_p5 = scmp.ne.s32.totalorder %s19_s23, %s2942_s24  ;;  %p2948_p7 = scmp.lt.s32.totalorder %s2942_s24, %s2942_s24 }
  0x14   :  { %p2949_p8 = por %p2948_p7, %p2947_p6 }
  0x16   :  { %p2950_p9 = pnand %p2949_p8, %p2943_p5 }
  0x18   :  { %2953 = shalt.err (!%p2950_p9)
}
  0x19   :  { %s3026_s25 = smov 128   ;;  %s3027_s26 = smov 8  }
  0x1a   :  { %24 = dma.hbm_to_vmem [thread:$0]  %s4010_s0, 512, %s19_s23, [#allocation3], %s3026_s25, %s3026_s25, %s3027_s26  }
  0x1b   :  { %s3028_s29 = smov [#allocation7]   ;;  %s3029_s5 = smov [#allocation8]  }
  0x1c   :  { %s43_s30 = sshll.u32 %s3028_s29, 4  ;;  %s52_s1 = sshll.u32 %s3029_s5, 4  ;;  %s44_s30 = int_to_ptr.vmem [resolvable:$true] %s43_s30  ;;  %s53_s1 = int_to_ptr.vmem [resolvable:$true] %s52_s1 }
  0x1d   :  { %s2962_s6 = scalar_lea.vmem %s44_s30, 128  ;;  %p2967_p11 = scmp.lt.s32.totalorder %s44_s30, %s44_s30 }
  0x1e   :  { %p2963_p10 = scmp.ne.s32.totalorder %s44_s30, %s2962_s6  ;;  %p2968_p12 = scmp.lt.s32.totalorder %s2962_s6, %s2962_s6 }
  0x20   :  { %p2969_p13 = por %p2968_p12, %p2967_p11 }
  0x22   :  { %p2970_p0 = pnand %p2969_p13, %p2963_p10 }
  0x24   :  { %2973 = shalt.err (!%p2970_p0)
}
  0x25   :  { %46 = dma.hbm_to_vmem [thread:$0]  %s4012_s2, 128, %s44_s30, [#allocation6]  }
  0x26   :  { %s2982_s9 = scalar_lea.vmem %s53_s1, 4096  ;;  %p2987_p2 = scmp.lt.s32.totalorder %s53_s1, %s53_s1 }
  0x27   :  { %p2983_p1 = scmp.ne.s32.totalorder %s53_s1, %s2982_s9  ;;  %p2988_p3 = scmp.lt.s32.totalorder %s2982_s9, %s2982_s9 }
  0x29   :  { %p2989_p4 = por %p2988_p3, %p2987_p2 }
  0x2b   :  { %p2990_p5 = pnand %p2989_p4, %p2983_p1 }
  0x2d   :  { %2993 = shalt.err (!%p2990_p5)
}
  0x2e   :  { %58 = dma.hbm_to_vmem [thread:$0]  %s4013_s3, 4096, %s53_s1, [#allocation9], %s3026_s25, %s3026_s25, %s3027_s26  }
  0x2f   :  { %3014 = dma.done.wait [#allocation3], 512  }
  0x30   :  { %3015 = vsyncadd [#allocation3], 4294966784 }
  0x31   :  { %3016 = dma.done.wait [#allocation6], 10368  }
  0x32   :  { %3017 = vsyncadd [#allocation6], 4294956928 }
  0x33   :  { %3018 = dma.done.wait [#allocation9], 4096  }
  0x34   :  { %3019 = vsyncadd [#allocation9], 4294963200  ;;  %v3030_v0 = vmov 0   ;;  %v74_v1 = vld [vmem:[#allocation2 + $0x10] sm:$0xff]  ;;  %v75_v2 = vld [vmem:[#allocation2 + $0x18] sm:$0xff]  ;;  %vm447_vm0 = vcmask 261120  }
  0x35   :  { %2570 = vset.pattern.permute.xlu1 %v3030_v0  ;;  %2569 = vset.pattern.permute.xlu0 %v3030_v0  ;;  %v72_v3 = vld [vmem:[#allocation2] sm:$0xff]  ;;  %v77_v4 = vpack.c.bf16 %v75_v2, %v74_v1  ;;  %v73_v5 = vld [vmem:[#allocation2 + $0x8] sm:$0xff]  ;;  %v3072_v10 = vld [vmem:[#allocation8 + $0xf0] sm:$0xff]  ;;  %s3034_s2 = smov [#allocation10]  }
  0x36   :  { %v76_v6 = vpack.c.bf16 %v73_v5, %v72_v3  ;;  %v2576_v7 = vld [vmem:[#allocation5] ss:$20 sps:$4 sm:$0xff]   ;;  %v2578_v9 = vld [vmem:[#allocation5 + $0x28] ss:$20 sps:$4 sm:$0xff]   ;;  %359 = vperm.xlu0 %2569, %v3072_v10   ;;  %v2580_v13 = vld [vmem:[#allocation5 + $0x50] ss:$20 sps:$4 sm:$0xff]  }
  0x37   :  { %2516 = vmatprep.subr.bf16.mxu0 %v77_v4  ;;  %2552 = vmatprep.subr.bf16.mxu1 %v77_v4  ;;  %v2577_v8 = vld [vmem:[#allocation5 + $0x140] ss:$20 sps:$4 sm:$0xff]   ;;  %v3074_v11 = vld [vmem:[#allocation8 + $0x70] sm:$0xff]  ;;  %v2581_v14 = vld [vmem:[#allocation5 + $0x190] ss:$20 sps:$4 sm:$0xff]   ;;  %s2143_s3 = sshll.u32 %s3034_s2, 4  ;;  %s2144_s3 = int_to_ptr.vmem [resolvable:$true] %s2143_s3 }
  0x38   :  { %2517 = vmatpush3.bf16.msra.mxu0 %v77_v4  ;;  %2554 = vmatpush3.bf16.msra.mxu1 %v77_v4  ;;  %v2579_v12 = vld [vmem:[#allocation5 + $0x168] ss:$20 sps:$4 sm:$0xff]   ;;  %v3080_v15 = vld [vmem:[#allocation8 + $0xf8] sm:$0xff]  ;;  %v3092_v18 = vld [vmem:[#allocation8 + $0xe8] sm:$0xff]  ;;  %s2994_s11 = scalar_lea.vmem %s2144_s3, 128  ;;  %p2999_p7 = scmp.lt.s32.totalorder %s2144_s3, %s2144_s3 }
  0x39   :  { %2518 = vmatprep.subr.bf16.mxu0 %v76_v6  ;;  %2553 = vmatprep.subr.bf16.mxu1 %v76_v6  ;;  %v3082_v16 = vld [vmem:[#allocation8 + $0x78] sm:$0xff]  ;;  %v3090_v17 = vld [vmem:[#allocation8 + $0xe0] sm:$0xff]  ;;  %v3096_v23 = vld [vmem:[#allocation8 + $0x68] sm:$0xff]  ;;  %p2995_p6 = scmp.ne.s32.totalorder %s2144_s3, %s2994_s11  ;;  %p3000_p8 = scmp.lt.s32.totalorder %s2994_s11, %s2994_s11 }
  0x3a   :  { %2520 = vmatprep.mubr.msk.bf16.mxu0 %vm447_vm0, %v2576_v7  ;;  %2536 = vmatprep.mubr.msk.bf16.mxu1 %vm447_vm0, %v2577_v8  ;;  %v2582_v19 = vld [vmem:[#allocation5 + $0x78] ss:$20 sps:$4 sm:$0xff]   ;;  %v2584_v21 = vld [vmem:[#allocation5 + $0xa0] ss:$20 sps:$4 sm:$0xff]   ;;  %v2586_v27 = vld [vmem:[#allocation5 + $0xc8] ss:$20 sps:$4 sm:$0xff]  }
  0x3b   :  { %279 = vperm.xlu1 %2570, %v3074_v11   ;;  %364 = vperm.xlu0 %2569, %v3080_v15   ;;  %v2583_v20 = vld [vmem:[#allocation5 + $0x1b8] ss:$20 sps:$4 sm:$0xff]   ;;  %v2585_v22 = vld [vmem:[#allocation5 + $0x1e0] ss:$20 sps:$4 sm:$0xff]   ;;  %v2587_v28 = vld [vmem:[#allocation5 + $0x208] ss:$20 sps:$4 sm:$0xff]   ;;  %p3001_p9 = por %p3000_p8, %p2999_p7 }
  0x3c   :  { %2519 = vmatpush3.bf16.msra.mxu0 %v76_v6  ;;  %2555 = vmatpush3.bf16.msra.mxu1 %v76_v6  ;;  %v3098_v24 = vld [vmem:[#allocation8 + $0x60] sm:$0xff]  ;;  %v3106_v25 = vld [vmem:[#allocation8 + $0xd8] sm:$0xff]  ;;  %v3108_v26 = vld [vmem:[#allocation8 + $0xd0] sm:$0xff]  ;;  %v3031_v6 = vmov 1  }
  0x3d   :  { %v2588_v29 = vld [vmem:[#allocation5 + $0xf0] ss:$20 sps:$4 sm:$0xff]   ;;  %v3114_v32 = vld [vmem:[#allocation8 + $0x50] sm:$0xff]  ;;  %v3122_v34 = vld [vmem:[#allocation8 + $0xc0] sm:$0xff]  ;;  %p3002_p10 = pnand %p3001_p9, %p2995_p6 }
  0x3e   :  { %v2589_v30 = vld [vmem:[#allocation5 + $0x230] ss:$20 sps:$4 sm:$0xff]   ;;  %v2590_v35 = vld [vmem:[#allocation5 + $0x118] ss:$20 sps:$4 sm:$0xff]   ;;  %v2594_v1 = vld [vmem:[#allocation5 + $0x8] ss:$20 sps:$4 sm:$0xff]  }
  0x3f   :  { %2521 = vmatmul.mubr.msk.bf16.vlgmr.msra.gmra.mxu0 %vm447_vm0, %v2578_v9  ;;  %2537 = vmatmul.mubr.msk.bf16.vlgmr.msra.gmra.mxu1 %vm447_vm0, %v2579_v12  ;;  %v3112_v31 = vld [vmem:[#allocation8 + $0x58] sm:$0xff]  ;;  %v3120_v33 = vld [vmem:[#allocation8 + $0xc8] sm:$0xff]  ;;  %v2591_v36 = vld [vmem:[#allocation5 + $0x258] ss:$20 sps:$4 sm:$0xff]  }
  0x40   :  { %2524 = vmatprep.mubr.msk.bf16.mxu0 %vm447_vm0, %v2580_v13  ;;  %2540 = vmatprep.mubr.msk.bf16.mxu1 %vm447_vm0, %v2581_v14  ;;  %v3126_v37 = vld [vmem:[#allocation8 + $0x48] sm:$0xff]  ;;  %v3128_v38 = vld [vmem:[#allocation8 + $0x40] sm:$0xff]  ;;  %v3134_v39 = vld [vmem:[#allocation8 + $0xb8] sm:$0xff] }
  0x41   :  { %284 = vperm.xlu1 %2570, %v3082_v16   ;;  %349 = vperm.xlu0 %2569, %v3090_v17   ;;  %v3136_v40 = vld [vmem:[#allocation8 + $0xb0] sm:$0xff]  ;;  %v3140_v41 = vld [vmem:[#allocation8 + $0x38] sm:$0xff]  ;;  %v3146_v43 = vld [vmem:[#allocation8 + $0xa8] sm:$0xff] }
  0x42   :  { %v3142_v42 = vld [vmem:[#allocation8 + $0x30] sm:$0xff]  ;;  %v3148_v44 = vld [vmem:[#allocation8 + $0xa0] sm:$0xff]  ;;  %v3154_v45 = vld [vmem:[#allocation8 + $0x28] sm:$0xff] }
  0x43   :  { %v3156_v46 = vld [vmem:[#allocation8 + $0x20] sm:$0xff]  ;;  %v3160_v47 = vld [vmem:[#allocation8 + $0x98] sm:$0xff]  ;;  %v3162_v48 = vld [vmem:[#allocation8 + $0x90] sm:$0xff] }
  0x44   :  { %v3166_v49 = vld [vmem:[#allocation8 + $0x18] sm:$0xff]  ;;  %v3168_v50 = vld [vmem:[#allocation8 + $0x10] sm:$0xff]  ;;  %v3172_v51 = vld [vmem:[#allocation8 + $0x88] sm:$0xff] }
  0x45   :  { %354 = vperm.xlu1 %2570, %v3092_v18   ;;  %269 = vperm.xlu0 %2569, %v3098_v24   ;;  %v3174_v52 = vld [vmem:[#allocation8 + $0x80] sm:$0xff]  ;;  %v3178_v53 = vld [vmem:[#allocation8 + $0x8] sm:$0xff] }
  0x46   :  { %v3180_v54 = vld [vmem:[#allocation8] sm:$0xff] }
  0x47   :  { %2525 = vmatmul.mubr.msk.bf16.gmra.mxu0 %vm447_vm0, %v2582_v19  ;;  %2541 = vmatmul.mubr.msk.bf16.gmra.mxu1 %vm447_vm0, %v2583_v20 }
  0x48   :  { %2528 = vmatprep.mubr.msk.bf16.mxu0 %vm447_vm0, %v2584_v21  ;;  %2544 = vmatprep.mubr.msk.bf16.mxu1 %vm447_vm0, %v2585_v22 }
  0x49   :  { %274 = vperm.xlu1 %2570, %v3096_v23   ;;  %339 = vperm.xlu0 %2569, %v3108_v26  }
  0x4d   :  { %344 = vperm.xlu1 %2570, %v3106_v25   ;;  %259 = vperm.xlu0 %2569, %v3114_v32  }
  0x4f   :  { %2529 = vmatmul.mubr.msk.bf16.gmra.mxu0 %vm447_vm0, %v2586_v27  ;;  %2545 = vmatmul.mubr.msk.bf16.gmra.mxu1 %vm447_vm0, %v2587_v28 }
  0x50   :  { %2532 = vmatprep.mubr.msk.bf16.mxu0 %vm447_vm0, %v2588_v29  ;;  %2548 = vmatprep.mubr.msk.bf16.mxu1 %vm447_vm0, %v2589_v30 }
  0x51   :  { %264 = vperm.xlu1 %2570, %v3112_v31   ;;  %329 = vperm.xlu0 %2569, %v3122_v34  }
  0x55   :  { %334 = vperm.xlu1 %2570, %v3120_v33   ;;  %249 = vperm.xlu0 %2569, %v3128_v38  }
  0x57   :  { %2533 = vmatmul.mubr.msk.bf16.gmra.mxu0 %vm447_vm0, %v2590_v35  ;;  %2549 = vmatmul.mubr.msk.bf16.gmra.mxu1 %vm447_vm0, %v2591_v36 }
  0x58   :  { %1153 = vmatprep.mubr.bf16.mxu1 %v2594_v1 }
  0x59   :  { %254 = vperm.xlu1 %2570, %v3126_v37   ;;  %319 = vperm.xlu0 %2569, %v3136_v40  }
  0x5d   :  { %324 = vperm.xlu1 %2570, %v3134_v39   ;;  %239 = vperm.xlu0 %2569, %v3142_v42  }
  0x61   :  { %244 = vperm.xlu1 %2570, %v3140_v41   ;;  %309 = vperm.xlu0 %2569, %v3148_v44  }
  0x65   :  { %314 = vperm.xlu1 %2570, %v3146_v43   ;;  %229 = vperm.xlu0 %2569, %v3156_v46  }
  0x69   :  { %234 = vperm.xlu1 %2570, %v3154_v45   ;;  %299 = vperm.xlu0 %2569, %v3162_v48  }
  0x6d   :  { %304 = vperm.xlu1 %2570, %v3160_v47   ;;  %219 = vperm.xlu0 %2569, %v3168_v50  }
  0x71   :  { %224 = vperm.xlu1 %2570, %v3166_v49   ;;  %289 = vperm.xlu0 %2569, %v3174_v52  }
  0x75   :  { %294 = vperm.xlu1 %2570, %v3172_v51   ;;  %209 = vperm.xlu0 %2569, %v3180_v54  }
  0x79   :  { %214 = vperm.xlu1 %2570, %v3178_v53   ;;  %2571 = vset.pattern.permute.xlu0 %v3031_v6 }
  0x7a   :  { %954 = vperm.xlu0 %2571, %v3072_v10  }
  0x7d   :  { %2572 = vset.pattern.permute.xlu1 %v3031_v6 }
  0x7e   :  { %958 = vperm.xlu1 %2572, %v3080_v15   ;;  %894 = vperm.xlu0 %2571, %v3082_v16  }
  0x82   :  { %890 = vperm.xlu1 %2572, %v3074_v11   ;;  %950 = vperm.xlu0 %2571, %v3092_v18  }
  0x86   :  { %946 = vperm.xlu1 %2572, %v3090_v17   ;;  %886 = vperm.xlu0 %2571, %v3096_v23  }
  0x8a   :  { %882 = vperm.xlu1 %2572, %v3098_v24   ;;  %942 = vperm.xlu0 %2571, %v3106_v25  }
  0x8e   :  { %938 = vperm.xlu1 %2572, %v3108_v26   ;;  %878 = vperm.xlu0 %2571, %v3112_v31  }
  0x92   :  { %874 = vperm.xlu1 %2572, %v3114_v32   ;;  %934 = vperm.xlu0 %2571, %v3120_v33  }
  0x96   :  { %930 = vperm.xlu1 %2572, %v3122_v34   ;;  %870 = vperm.xlu0 %2571, %v3126_v37  }
  0x9a   :  { %866 = vperm.xlu1 %2572, %v3128_v38   ;;  %926 = vperm.xlu0 %2571, %v3134_v39  }
  0x9e   :  { %922 = vperm.xlu1 %2572, %v3136_v40   ;;  %862 = vperm.xlu0 %2571, %v3140_v41  }
  0xa2   :  { %858 = vperm.xlu1 %2572, %v3142_v42   ;;  %918 = vperm.xlu0 %2571, %v3146_v43  }
  0xa6   :  { %914 = vperm.xlu1 %2572, %v3148_v44   ;;  %854 = vperm.xlu0 %2571, %v3154_v45  }
  0xaa   :  { %850 = vperm.xlu1 %2572, %v3156_v46   ;;  %910 = vperm.xlu0 %2571, %v3160_v47  }
  0xae   :  { %906 = vperm.xlu1 %2572, %v3162_v48   ;;  %846 = vperm.xlu0 %2571, %v3166_v49  }
  0xb1   :  { %v3184_v55 = vpop.permute.xlu0 %359 }
  0xb2   :  { %842 = vperm.xlu1 %2572, %v3168_v50   ;;  %902 = vperm.xlu0 %2571, %v3172_v51  }
  0xb6   :  { %v3186_v56 = vpop.permute.xlu1 %279  ;;  %v3188_v57 = vpop.permute.xlu0 %364  ;;  %898 = vperm.xlu1 %2572, %v3174_v52   ;;  %838 = vperm.xlu0 %2571, %v3178_v53  }
  0xba   :  { %834 = vperm.xlu1 %2572, %v3180_v54  }
  0xbc   :  { %v3190_v58 = vpop.permute.xlu1 %284  ;;  %v3192_v59 = vpop.permute.xlu0 %349 }
  0xc0   :  { %v3194_v60 = vpop.permute.xlu1 %354  ;;  %v3196_v61 = vpop.permute.xlu0 %269 }
  0xc4   :  { %v3198_v62 = vpop.permute.xlu1 %274  ;;  %v3200_v63 = vpop.permute.xlu0 %339 }
  0xc8   :  { %v3202_v0 = vpop.permute.xlu1 %344  ;;  %v3204_v2 = vpop.permute.xlu0 %259 }
  0xcc   :  { %v3206_v3 = vpop.permute.xlu1 %264  ;;  %v3208_v4 = vpop.permute.xlu0 %329 }
  0xd0   :  { %v3210_v5 = vpop.permute.xlu1 %334  ;;  %v3212_v7 = vpop.permute.xlu0 %249 }
  0xd4   :  { %v3216_v8 = vpop.permute.xlu1 %254  ;;  %v3220_v9 = vpop.permute.xlu0 %319 }
  0xd8   :  { %v3222_v12 = vpop.permute.xlu1 %324  ;;  %v3226_v13 = vpop.permute.xlu0 %239 }
  0xdc   :  { %v3230_v10 = vpop.permute.xlu1 %244  ;;  %v3236_v17 = vpop.permute.xlu0 %309 }
  0xdd   :  { %4022 = vst [vmem:[#allocation16_spill] sm:$0xff] %v3236_v17 }
  0xe0   :  { %v3238_v20 = vpop.permute.xlu1 %314  ;;  %v3248_v25 = vpop.permute.xlu0 %229 }
  0xe1   :  { %4025 = vst [vmem:[#allocation19_spill] sm:$0xff] %v3248_v25 }
  0xe4   :  { %v3256_v28 = vpop.permute.xlu1 %234  ;;  %v300_v34 = vpop.permute.xlu0 %299 }
  0xe5   :  { %4028 = vst [vmem:[#allocation22_spill] sm:$0xff] %v3256_v28 }
  0xe8   :  { %v305_v36 = vpop.permute.xlu1 %304 }
  0xff   :  { %v2522_v14 = vpop.f32.mrf.mxu0  ;;  %v2538_v11 = vpop.f32.mrf.mxu1 }
 0x101   :  { %v3234_v15 = vpop.f32.mrf.mxu0  ;;  %v594_v16 = vpop.f32.mrf.mxu1 }
 0x102   :  { %4021 = vst [vmem:[#allocation15_spill] sm:$0xff] %v3234_v15  ;;  %v225_v15 = vpop.permute.xlu1 %224 }
 0x103   :  { %v2523_v18 = vpop.f32.mrf.mxu0  ;;  %v2539_v19 = vpop.f32.mrf.mxu1 }
 0x104   :  { %v3288_v17 = vadd.f32 %v2523_v18, %v225_v15 }
 0x105   :  { %v3242_v21 = vpop.f32.mrf.mxu0  ;;  %v597_v22 = vpop.f32.mrf.mxu1 }
 0x106   :  { %4023 = vst [vmem:[#allocation17_spill] sm:$0xff] %v3242_v21  ;;  %v220_v21 = vpop.permute.xlu0 %219  ;;  %4032 = vst [vmem:[#allocation26_spill] sm:$0xff] %v3288_v17  ;;  %v295_v41 = vpop.permute.xlu1 %294  ;;  %v660_v18 = vmul.f32 0.5, %v3288_v17 }
 0x107   :  { %v3244_v23 = vpop.f32.mrf.mxu0  ;;  %v3246_v24 = vpop.f32.mrf.mxu1  ;;  %v3282_v39 = vadd.f32 %v2522_v14, %v220_v21  ;;  %v3296_v14 = vadd.f32 %v597_v22, %v295_v41 }
 0x108   :  { %4024 = vst [vmem:[#allocation18_spill] sm:$0xff] %v3244_v23  ;;  %v3293_v23 = vadd.f32 %v2539_v19, %v305_v36  ;;  %v3387_v53 = vadd.f32 %v3246_v24, %v3220_v9 }
 0x109   :  { %v3252_v26 = vpop.f32.mrf.mxu0  ;;  %v3254_v27 = vpop.f32.mrf.mxu1  ;;  %4030 = vst [vmem:[#allocation24_spill] sm:$0xff] %v3282_v39  ;;  %v659_v44 = vmul.f32 0.5, %v3282_v39  ;;  %4033 = vst [vmem:[#allocation27_spill] sm:$0xff] %v3296_v14 }
 0x10a   :  { %4026 = vst [vmem:[#allocation20_spill] sm:$0xff] %v3252_v26  ;;  %4027 = vst [vmem:[#allocation21_spill] sm:$0xff] %v3254_v27  ;;  %v290_v40 = vpop.permute.xlu0 %289  ;;  %v676_v19 = vmul.f32 0.5, %v3293_v23 }
 0x10b   :  { %v3258_v29 = vpop.f32.mrf.mxu0  ;;  %v3260_v30 = vpop.f32.mrf.mxu1  ;;  %v3286_v28 = vadd.f32 %v594_v16, %v290_v40  ;;  %2690 = vtanh.f32 %v659_v44 }
 0x10c   :  { %v3394_v41 = vadd.f32 %v3258_v29, %v3230_v10 }
 0x10d   :  { %v3264_v31 = vpop.f32.mrf.mxu0  ;;  %v3266_v32 = vpop.f32.mrf.mxu1  ;;  %4031 = vst [vmem:[#allocation25_spill] sm:$0xff] %v3286_v28 }
 0x10e   :  { %4029 = vst [vmem:[#allocation23_spill] sm:$0xff] %v3264_v31  ;;  %v3284_v31 = vadd.f32 %v2538_v11, %v300_v34  ;;  %v673_v11 = vmul.f32 0.5, %v3286_v28  ;;  %v3402_v9 = vadd.f32 %v3266_v32, %v3238_v20  ;;  %v664_v32 = vmul.f32 0.5, %v3394_v41 }
 0x10f   :  { %v3268_v33 = vpop.f32.mrf.mxu0  ;;  %v2546_v35 = vpop.f32.mrf.mxu1 }
 0x110   :  { %v675_v43 = vmul.f32 0.5, %v3284_v31  ;;  %v3300_v16 = vadd.f32 %v2546_v35, %v3200_v63  ;;  %v674_v63 = vmul.f32 0.5, %v3296_v14  ;;  %v3351_v52 = vadd.f32 %v3268_v33, %v3204_v2 }
 0x111   :  { %v3272_v1 = vpop.f32.mrf.mxu0  ;;  %v3274_v6 = vpop.f32.mrf.mxu1 }
 0x112   :  { %2692 = vtanh.f32 %v675_v43  ;;  %v3359_v51 = vadd.f32 %v3274_v6, %v3208_v4  ;;  %v3373_v4 = vadd.f32 %v3260_v30, %v3222_v12  ;;  %v667_v54 = vmul.f32 0.5, %v3351_v52  ;;  %v4034_v43 = vld [vmem:[#allocation18_spill] sm:$0xff] }
 0x113   :  { %v2531_v38 = vpop.f32.mrf.mxu0  ;;  %v2547_v37 = vpop.f32.mrf.mxu1  ;;  %2694 = vtanh.f32 %v673_v11  ;;  %v3408_v11 = vadd.f32 %v4034_v43, %v3226_v13 }
 0x114   :  { %v3304_v46 = vadd.f32 %v2531_v38, %v3206_v3  ;;  %v3310_v21 = vadd.f32 %v2547_v37, %v3202_v0  ;;  %v683_v3 = vmul.f32 0.5, %v3300_v16  ;;  %2696 = vtanh.f32 %v660_v18  ;;  %v4035_v18 = vld [vmem:[#allocation16_spill] sm:$0xff] }
 0x115   :  { %v3278_v26 = vpop.f32.mrf.mxu0  ;;  %v629_v25 = vpop.f32.mrf.mxu1  ;;  %2698 = vtanh.f32 %v676_v19  ;;  %v681_v12 = vmul.f32 0.5, %v3359_v51 }
 0x116   :  { %v3314_v22 = vadd.f32 %v629_v25, %v3210_v5  ;;  %v668_v48 = vmul.f32 0.5, %v3304_v46  ;;  %v684_v0 = vmul.f32 0.5, %v3310_v21  ;;  %2700 = vtanh.f32 %v674_v63  ;;  %v4037_v63 = vld [vmem:[#allocation22_spill] sm:$0xff] }
 0x117   :  { %v2534_v27 = vpop.f32.mrf.mxu0  ;;  %v2550_v42 = vpop.f32.mrf.mxu1  ;;  %2702 = vtanh.f32 %v683_v3  ;;  %v4038_v3 = vld [vmem:[#allocation23_spill] sm:$0xff] }
 0x118   :  { %v682_v35 = vmul.f32 0.5, %v3314_v22  ;;  %v3323_v5 = vadd.f32 %v2534_v27, %v3186_v56  ;;  %v3326_v25 = vadd.f32 %v2550_v42, %v3184_v55  ;;  %2704 = vtanh.f32 %v668_v48  ;;  %v4039_v48 = vld [vmem:[#allocation19_spill] sm:$0xff] }
 0x119   :  { %v578_v15 = vpop.f32.mrf.mxu0  ;;  %v642_v45 = vpop.f32.mrf.mxu1  ;;  %2706 = vtanh.f32 %v684_v0 }
 0x11a   :  { %v3329_v38 = vadd.f32 %v578_v15, %v3196_v61  ;;  %v3332_v49 = vadd.f32 %v642_v45, %v3192_v59  ;;  %v671_v56 = vmul.f32 0.5, %v3323_v5  ;;  %v687_v55 = vmul.f32 0.5, %v3326_v25  ;;  %v4036_v45 = vld [vmem:[#allocation21_spill] sm:$0xff] }
 0x11b   :  { %v2535_v34 = vpop.f32.mrf.mxu0  ;;  %v2551_v47 = vpop.f32.mrf.mxu1  ;;  %2708 = vtanh.f32 %v682_v35  ;;  %v679_v15 = vmul.f32 0.5, %v3387_v53  ;;  %v3414_v19 = vadd.f32 %v4036_v45, %v4035_v18  ;;  %v678_v35 = vmul.f32 0.5, %v3402_v9 }
 0x11c   :  { %v3335_v50 = vadd.f32 %v2535_v34, %v3190_v58  ;;  %v3341_v27 = vadd.f32 %v2551_v47, %v3188_v57  ;;  %v669_v59 = vmul.f32 0.5, %v3329_v38  ;;  %v685_v61 = vmul.f32 0.5, %v3332_v49  ;;  %v4040_v47 = vld [vmem:[#allocation20_spill] sm:$0xff] }
 0x11d   :  { %v581_v36 = vpop.f32.mrf.mxu0  ;;  %v645_v37 = vpop.f32.mrf.mxu1  ;;  %2710 = vtanh.f32 %v671_v56  ;;  %v3419_v34 = vadd.f32 %v4038_v3, %v4037_v63  ;;  %v3423_v0 = vadd.f32 %v4040_v47, %v4039_v48  ;;  %v663_v56 = vmul.f32 0.5, %v3408_v11 }
 0x11e   :  { %v3347_v58 = vadd.f32 %v581_v36, %v3198_v62  ;;  %v672_v40 = vmul.f32 0.5, %v3335_v50  ;;  %v3355_v57 = vadd.f32 %v645_v37, %v3194_v60  ;;  %2712 = vtanh.f32 %v687_v55  ;;  %v3369_v60 = vpop.eup %2690  ;;  %v210_v37 = vpop.permute.xlu0 %209 }
 0x11f   :  { %v688_v42 = vmul.f32 0.5, %v3341_v27  ;;  %v3365_v62 = vadd.f32 %v3278_v26, %v3216_v8  ;;  %2714 = vtanh.f32 %v669_v59  ;;  %v3376_v6 = vpop.eup %2692  ;;  %v3381_v8 = vadd.f32 %v3272_v1, %v3212_v7  ;;  %v4041_v59 = vld [vmem:[#allocation15_spill] sm:$0xff] }
 0x120   :  { %v670_v2 = vmul.f32 0.5, %v3347_v58  ;;  %2716 = vtanh.f32 %v685_v61  ;;  %v686_v33 = vmul.f32 0.5, %v3355_v57  ;;  %v3383_v26 = vpop.eup %2694  ;;  %v680_v1 = vmul.f32 0.5, %v3373_v4 }
 0x121   :  { %2718 = vtanh.f32 %v672_v40  ;;  %v3390_v30 = vpop.eup %2696  ;;  %v666_v44 = vmul.f32 0.5, %v3365_v62  ;;  %v665_v10 = vmul.f32 0.5, %v3381_v8  ;;  %v3428_v61 = vadd.f32 %v4041_v59, %v210_v37 }
 0x122   :  { %2720 = vtanh.f32 %v688_v42  ;;  %v3397_v7 = vpop.eup %2698  ;;  %v677_v40 = vmul.f32 0.5, %v3414_v19  ;;  %v661_v43 = vmul.f32 0.5, %v3423_v0 }
 0x123   :  { %2722 = vtanh.f32 %v670_v2  ;;  %v3404_v24 = vpop.eup %2700  ;;  %4042 = vst [vmem:[#allocation18_spill] sm:$0xff] %v3428_v61  ;;  %v215_v2 = vpop.permute.xlu1 %214 }
 0x124   :  { %2724 = vtanh.f32 %v686_v33  ;;  %v2703_v29 = vpop.eup %2702  ;;  %v662_v33 = vmul.f32 0.5, %v3419_v34 }
 0x125   :  { %2726 = vtanh.f32 %v667_v54  ;;  %v2705_v20 = vpop.eup %2704 }
 0x126   :  { %2728 = vtanh.f32 %v681_v12  ;;  %v2707_v13 = vpop.eup %2706 }
 0x127   :  { %2730 = vtanh.f32 %v666_v44  ;;  %v4043_v44 = vld [vmem:[#allocation17_spill] sm:$0xff] }
 0x128   :  { %2732 = vtanh.f32 %v680_v1  ;;  %v2709_v36 = vpop.eup %2708  ;;  %v3433_v1 = vadd.f32 %v4043_v44, %v215_v2 }
 0x129   :  { %2734 = vtanh.f32 %v665_v10 }
 0x12a   :  { %v2711_v55 = vpop.eup %2710  ;;  %2736 = vtanh.f32 %v679_v15  ;;  %4044 = vst [vmem:[#allocation16_spill] sm:$0xff] %v3433_v1  ;;  %v657_v15 = vmul.f32 0.5, %v3428_v61  ;;  %v732_v61 = vmul.f32 0.5, %v2705_v20 }
 0x12b   :  { %v2713_v42 = vpop.eup %2712  ;;  %2738 = vtanh.f32 %v664_v32  ;;  %v735_v54 = vmul.f32 0.5, %v2711_v55  ;;  %v748_v32 = vmul.f32 0.5, %v2707_v13  ;;  %v658_v55 = vmul.f32 0.5, %v3433_v1 }
 0x12c   :  { %v2715_v12 = vpop.eup %2714  ;;  %2740 = vtanh.f32 %v678_v35  ;;  %v751_v10 = vmul.f32 0.5, %v2713_v42  ;;  %v747_v42 = vmul.f32 0.5, %v2703_v29 }
 0x12d   :  { %v2717_v18 = vpop.eup %2716  ;;  %2742 = vtanh.f32 %v663_v56  ;;  %v767_v48 = vadd.f32 0.5, %v735_v54  ;;  %v733_v44 = vmul.f32 0.5, %v2715_v12  ;;  %v780_v13 = vadd.f32 0.5, %v748_v32 }
 0x12e   :  { %v2719_v45 = vpop.eup %2718  ;;  %2744 = vtanh.f32 %v677_v40  ;;  %v749_v63 = vmul.f32 0.5, %v2717_v18  ;;  %v783_v59 = vadd.f32 0.5, %v751_v10  ;;  %v746_v10 = vmul.f32 0.5, %v2709_v36 }
 0x12f   :  { %v2721_v3 = vpop.eup %2720  ;;  %2746 = vtanh.f32 %v662_v33  ;;  %v736_v47 = vmul.f32 0.5, %v2719_v45  ;;  %v799_v54 = vmul.f32 %v767_v48, %v3323_v5  ;;  %v779_v20 = vadd.f32 0.5, %v747_v42 }
 0x130   :  { %v2723_v37 = vpop.eup %2722  ;;  %2748 = vtanh.f32 %v661_v43  ;;  %v752_v2 = vmul.f32 0.5, %v2721_v3  ;;  %v781_v40 = vadd.f32 0.5, %v749_v63  ;;  %v815_v3 = vmul.f32 %v783_v59, %v3326_v25 }
 0x131   :  { %v2725_v35 = vpop.eup %2724  ;;  %v768_v56 = vadd.f32 0.5, %v736_v47  ;;  %v734_v28 = vmul.f32 0.5, %v2723_v37  ;;  %v765_v63 = vadd.f32 0.5, %v733_v44  ;;  %2750 = vtanh.f32 %v658_v55 }
 0x132   :  { %v2727_v39 = vpop.eup %2726  ;;  %v784_v18 = vadd.f32 0.5, %v752_v2  ;;  %v750_v14 = vmul.f32 0.5, %v2725_v35  ;;  %v813_v32 = vmul.f32 %v781_v40, %v3332_v49  ;;  %v764_v36 = vadd.f32 0.5, %v732_v61 }
 0x133   :  { %v2729_v33 = vpop.eup %2728  ;;  %v800_v45 = vmul.f32 %v768_v56, %v3335_v50  ;;  %v766_v1 = vadd.f32 0.5, %v734_v28  ;;  %v731_v37 = vmul.f32 0.5, %v2727_v39  ;;  %v812_v39 = vmul.f32 %v780_v13, %v3310_v21 }
 0x134   :  { %v2731_v43 = vpop.eup %2730  ;;  %v816_v29 = vmul.f32 %v784_v18, %v3341_v27  ;;  %v782_v12 = vadd.f32 0.5, %v750_v14  ;;  %v745_v17 = vmul.f32 0.5, %v2729_v33  ;;  %v778_v59 = vadd.f32 0.5, %v746_v10 }
 0x135   :  { %v2733_v47 = vpop.eup %2732  ;;  %v824_v2 = vpack.c.bf16 %v800_v45, %v799_v54  ;;  %v730_v48 = vmul.f32 0.5, %v2731_v43  ;;  %v798_v25 = vmul.f32 %v766_v1, %v3347_v58  ;;  %2752 = vtanh.f32 %v657_v15 }
 0x136   :  { %v2735_v35 = vpop.eup %2734  ;;  %v814_v5 = vmul.f32 %v782_v12, %v3355_v57  ;;  %v832_v50 = vpack.c.bf16 %v816_v29, %v815_v3  ;;  %v744_v14 = vmul.f32 0.5, %v2733_v47  ;;  %v763_v56 = vadd.f32 0.5, %v731_v37 }
 0x137   :  { %v2737_v28 = vpop.eup %2736  ;;  %v729_v49 = vmul.f32 0.5, %v2735_v35  ;;  %v797_v57 = vmul.f32 %v765_v63, %v3329_v38  ;;  %v811_v61 = vmul.f32 %v779_v20, %v3300_v16  ;;  %v777_v18 = vadd.f32 0.5, %v745_v17 }
 0x138   :  { %v2739_v27 = vpop.eup %2738  ;;  %2270 = vmatprep.subr.bf16.mxu1 %v832_v50  ;;  %v831_v42 = vpack.c.bf16 %v814_v5, %v813_v32  ;;  %v743_v55 = vmul.f32 0.5, %v2737_v28  ;;  %v796_v21 = vmul.f32 %v764_v36, %v3304_v46  ;;  %v762_v33 = vadd.f32 0.5, %v730_v48 }
 0x139   :  { %v2741_v44 = vpop.eup %2740  ;;  %2271 = vmatpush3.bf16.msra.mxu1 %v824_v2  ;;  %v728_v1 = vmul.f32 0.5, %v2739_v27  ;;  %v823_v13 = vpack.c.bf16 %v798_v25, %v797_v57  ;;  %v776_v45 = vadd.f32 0.5, %v744_v14  ;;  %v810_v43 = vmul.f32 %v778_v59, %v3314_v22 }
 0x13a   :  { %v2743_v40 = vpop.eup %2742  ;;  %2272 = vmatprep.subr.bf16.mxu1 %v831_v42  ;;  %v742_v15 = vmul.f32 0.5, %v2741_v44  ;;  %v830_v10 = vpack.c.bf16 %v812_v39, %v811_v61  ;;  %v795_v29 = vmul.f32 %v763_v56, %v3351_v52  ;;  %v761_v12 = vadd.f32 0.5, %v729_v49 }
 0x13b   :  { %v2745_v58 = vpop.eup %2744  ;;  %v727_v3 = vmul.f32 0.5, %v2743_v40  ;;  %v775_v17 = vadd.f32 0.5, %v743_v55  ;;  %v809_v47 = vmul.f32 %v777_v18, %v3359_v51  ;;  %v760_v46 = vadd.f32 0.5, %v728_v1 }
 0x13c   :  { %v2747_v54 = vpop.eup %2746  ;;  %v741_v16 = vmul.f32 0.5, %v2745_v58  ;;  %v822_v20 = vpack.c.bf16 %v796_v21, %v795_v29  ;;  %v794_v63 = vmul.f32 %v762_v33, %v3365_v62  ;;  %v740_v2 = vmul.f32 0.5, %v3397_v7  ;;  %v4046_v33 = vld [vmem:[#allocation27_spill] sm:$0xff] }
 0x13d   :  { %v2749_v38 = vpop.eup %2748  ;;  %2273 = vmatpush3.bf16.msra.mxu1 %v823_v13  ;;  %v726_v37 = vmul.f32 0.5, %v2747_v54  ;;  %v808_v22 = vmul.f32 %v776_v45, %v3373_v4  ;;  %v774_v35 = vadd.f32 0.5, %v742_v15  ;;  %v829_v32 = vpack.c.bf16 %v810_v43, %v809_v47  ;;  %v4047_v54 = vld [vmem:[#allocation24_spill] sm:$0xff]  ;;  %v4048_v15 = vld [vmem:[#allocation25_spill] sm:$0xff] }
 0x13e   :  { %2274 = vmatprep.subr.bf16.mxu1 %v830_v10  ;;  %v759_v5 = vadd.f32 0.5, %v727_v3  ;;  %v725_v52 = vmul.f32 0.5, %v2749_v38  ;;  %v793_v50 = vmul.f32 %v761_v12, %v3381_v8  ;;  %v739_v28 = vmul.f32 0.5, %v3376_v6  ;;  %v2751_v4 = vpop.eup %2750  ;;  %v4049_v10 = vld [vmem:[#allocation16_spill] sm:$0xff]  ;;  %v4050_v3 = vld [vmem:[#allocation18_spill] sm:$0xff] }
 0x13f   :  { %v807_v51 = vmul.f32 %v775_v17, %v3387_v53  ;;  %v773_v36 = vadd.f32 0.5, %v741_v16  ;;  %v724_v48 = vmul.f32 0.5, %v3390_v30  ;;  %v792_v62 = vmul.f32 %v760_v46, %v3394_v41  ;;  %v2592_v17 = vld [vmem:[#allocation5 + $0x4] ss:$20 sps:$4 sm:$0xff]   ;;  %v2597_v47 = vld [vmem:[#allocation5 + $0x2c] ss:$20 sps:$4 sm:$0xff]  }
 0x140   :  { %v758_v7 = vadd.f32 0.5, %v726_v37  ;;  %v821_v25 = vpack.c.bf16 %v794_v63, %v793_v50  ;;  %v772_v27 = vadd.f32 0.5, %v740_v2  ;;  %v738_v14 = vmul.f32 0.5, %v3404_v24  ;;  %v2595_v16 = vld [vmem:[#allocation5 + $0x30] ss:$20 sps:$4 sm:$0xff]  }
 0x141   :  { %2275 = vmatpush3.bf16.msra.mxu1 %v822_v20  ;;  %v806_v39 = vmul.f32 %v774_v35, %v3402_v9  ;;  %v828_v8 = vpack.c.bf16 %v808_v22, %v807_v51  ;;  %v723_v59 = vmul.f32 0.5, %v3369_v60  ;;  %v791_v6 = vmul.f32 %v759_v5, %v3408_v11  ;;  %v2598_v46 = vld [vmem:[#allocation5 + $0x58] ss:$20 sps:$4 sm:$0xff]   ;;  %v2600_v37 = vld [vmem:[#allocation5 + $0x54] ss:$20 sps:$4 sm:$0xff]  }
 0x142   :  { %2276 = vmatprep.subr.bf16.mxu1 %v829_v32  ;;  %v757_v53 = vadd.f32 0.5, %v725_v52  ;;  %v2753_v42 = vpop.eup %2752  ;;  %v771_v44 = vadd.f32 0.5, %v739_v28  ;;  %v737_v30 = vmul.f32 0.5, %v3383_v26  ;;  %v805_v41 = vmul.f32 %v773_v36, %v3414_v19  ;;  %v4045_v19 = vld [vmem:[#allocation26_spill] sm:$0xff]  ;;  %v2601_v20 = vld [vmem:[#allocation5 + $0x80] ss:$20 sps:$4 sm:$0xff]  }
 0x143   :  { %v756_v56 = vadd.f32 0.5, %v724_v48  ;;  %v722_v49 = vmul.f32 0.5, %v2751_v4  ;;  %v820_v57 = vpack.c.bf16 %v792_v62, %v791_v6  ;;  %v790_v24 = vmul.f32 %v758_v7, %v3419_v34  ;;  %v2603_v63 = vld [vmem:[#allocation5 + $0x7c] ss:$20 sps:$4 sm:$0xff]   ;;  %v2606_v22 = vld [vmem:[#allocation5 + $0xa4] ss:$20 sps:$4 sm:$0xff]  }
 0x144   :  { %v804_v9 = vmul.f32 %v772_v27, %v3293_v23  ;;  %v770_v40 = vadd.f32 0.5, %v738_v14  ;;  %v827_v60 = vpack.c.bf16 %v806_v39, %v805_v41  ;;  %v755_v55 = vadd.f32 0.5, %v723_v59  ;;  %v2604_v2 = vld [vmem:[#allocation5 + $0xa8] ss:$20 sps:$4 sm:$0xff]   ;;  %v2607_v35 = vld [vmem:[#allocation5 + $0xd0] ss:$20 sps:$4 sm:$0xff]  }
 0x145   :  { %2277 = vmatpush3.bf16.msra.mxu1 %v821_v25  ;;  %v721_v11 = vmul.f32 0.5, %v2753_v42  ;;  %v789_v61 = vmul.f32 %v757_v53, %v3423_v0  ;;  %v803_v18 = vmul.f32 %v771_v44, %v3284_v31  ;;  %v769_v26 = vadd.f32 0.5, %v737_v30  ;;  %v2609_v32 = vld [vmem:[#allocation5 + $0xcc] ss:$20 sps:$4 sm:$0xff]   ;;  %v2612_v52 = vld [vmem:[#allocation5 + $0xf4] ss:$20 sps:$4 sm:$0xff]   ;;  %v3476_v53 = vpop.permute.xlu1 %958  ;;  %v3478_v44 = vpop.permute.xlu0 %954 }
 0x146   :  { %2278 = vmatprep.subr.bf16.mxu1 %v828_v8  ;;  %v788_v58 = vmul.f32 %v756_v56, %v4045_v19  ;;  %v754_v1 = vadd.f32 0.5, %v722_v49  ;;  %v802_v13 = vmul.f32 %v770_v40, %v4046_v33  ;;  %v787_v23 = vmul.f32 %v755_v55, %v4047_v54  ;;  %v2610_v5 = vld [vmem:[#allocation5 + $0xf8] ss:$20 sps:$4 sm:$0xff]   ;;  %v2613_v50 = vld [vmem:[#allocation5 + $0x120] ss:$20 sps:$4 sm:$0xff]  }
 0x147   :  { %v819_v21 = vpack.c.bf16 %v790_v24, %v789_v61  ;;  %v826_v34 = vpack.c.bf16 %v804_v9, %v803_v18  ;;  %v753_v45 = vadd.f32 0.5, %v721_v11  ;;  %v801_v43 = vmul.f32 %v769_v26, %v4048_v15  ;;  %v2615_v28 = vld [vmem:[#allocation5 + $0x11c] ss:$20 sps:$4 sm:$0xff]   ;;  %v2618_v36 = vld [vmem:[#allocation5 + $0x144] ss:$20 sps:$4 sm:$0xff]  }
 0x148   :  { %v818_v0 = vpack.c.bf16 %v788_v58, %v787_v23  ;;  %v786_v38 = vmul.f32 %v754_v1, %v4049_v10  ;;  %v2616_v51 = vld [vmem:[#allocation5 + $0x148] ss:$20 sps:$4 sm:$0xff]   ;;  %v2619_v48 = vld [vmem:[#allocation5 + $0x170] ss:$20 sps:$4 sm:$0xff]   ;;  %v2621_v62 = vld [vmem:[#allocation5 + $0x16c] ss:$20 sps:$4 sm:$0xff]  }
 0x149   :  { %2279 = vmatpush3.bf16.msra.mxu1 %v820_v57  ;;  %v825_v31 = vpack.c.bf16 %v802_v13, %v801_v43  ;;  %v785_v29 = vmul.f32 %v753_v45, %v4050_v3  ;;  %v2622_v7 = vld [vmem:[#allocation5 + $0x198] ss:$20 sps:$4 sm:$0xff]   ;;  %v2624_v25 = vld [vmem:[#allocation5 + $0x194] ss:$20 sps:$4 sm:$0xff]   ;;  %v2627_v27 = vld [vmem:[#allocation5 + $0x1bc] ss:$20 sps:$4 sm:$0xff]   ;;  %v3480_v41 = vpop.permute.xlu1 %890  ;;  %v3482_v56 = vpop.permute.xlu0 %894 }
 0x14a   :  { %2280 = vmatprep.subr.bf16.mxu1 %v827_v60  ;;  %v2625_v4 = vld [vmem:[#allocation5 + $0x1c0] ss:$20 sps:$4 sm:$0xff]   ;;  %v2628_v14 = vld [vmem:[#allocation5 + $0x1e8] ss:$20 sps:$4 sm:$0xff]   ;;  %v2630_v39 = vld [vmem:[#allocation5 + $0x1e4] ss:$20 sps:$4 sm:$0xff]  }
 0x14b   :  { %v817_v12 = vpack.c.bf16 %v786_v38, %v785_v29  ;;  %v2631_v8 = vld [vmem:[#allocation5 + $0x210] ss:$20 sps:$4 sm:$0xff]   ;;  %v2633_v59 = vld [vmem:[#allocation5 + $0x20c] ss:$20 sps:$4 sm:$0xff]   ;;  %v2636_v42 = vld [vmem:[#allocation5 + $0x234] ss:$20 sps:$4 sm:$0xff]  }
 0x14c   :  { %v2634_v6 = vld [vmem:[#allocation5 + $0x238] ss:$20 sps:$4 sm:$0xff]   ;;  %v2637_v30 = vld [vmem:[#allocation5 + $0x260] ss:$20 sps:$4 sm:$0xff]   ;;  %v2639_v49 = vld [vmem:[#allocation5 + $0x25c] ss:$20 sps:$4 sm:$0xff]  }
 0x14d   :  { %2281 = vmatpush3.bf16.msra.mxu1 %v819_v21  ;;  %v3484_v57 = vpop.permute.xlu1 %946  ;;  %v3486_v24 = vpop.permute.xlu0 %950 }
 0x14e   :  { %2282 = vmatprep.subr.bf16.mxu1 %v826_v34 }
 0x151   :  { %2283 = vmatpush3.bf16.msra.mxu1 %v818_v0  ;;  %v3488_v9 = vpop.permute.xlu1 %882  ;;  %v3490_v40 = vpop.permute.xlu0 %886 }
 0x152   :  { %2284 = vmatprep.subr.bf16.mxu1 %v825_v31 }
 0x155   :  { %2285 = vmatpush3.bf16.msra.mxu1 %v817_v12  ;;  %v3492_v60 = vpop.permute.xlu1 %938  ;;  %v3494_v55 = vpop.permute.xlu0 %942 }
 0x158   :  { %1154 = vmatmul.mubr.bf16.vlgmr.msra.gmra.mxu1 %v2592_v17 }
 0x159   :  { %1161 = vmatprep.mubr.bf16.mxu1 %v2595_v16  ;;  %v3496_v11 = vpop.permute.xlu1 %874  ;;  %v3498_v61 = vpop.permute.xlu0 %878 }
 0x15d   :  { %v3500_v18 = vpop.permute.xlu1 %930  ;;  %v3502_v26 = vpop.permute.xlu0 %934 }
 0x160   :  { %1162 = vmatmul.mubr.bf16.gmra.mxu1 %v2597_v47 }
 0x161   :  { %1169 = vmatprep.mubr.bf16.mxu1 %v2598_v46  ;;  %v3504_v19 = vpop.permute.xlu1 %866  ;;  %v3506_v58 = vpop.permute.xlu0 %870 }
 0x165   :  { %v3508_v1 = vpop.permute.xlu1 %922  ;;  %v3510_v21 = vpop.permute.xlu0 %926 }
 0x168   :  { %1170 = vmatmul.mubr.bf16.gmra.mxu1 %v2600_v37 }
 0x169   :  { %1177 = vmatprep.mubr.bf16.mxu1 %v2601_v20  ;;  %v859_v33 = vpop.permute.xlu1 %858  ;;  %v3512_v13 = vpop.permute.xlu0 %862 }
 0x16d   :  { %v3514_v34 = vpop.permute.xlu1 %914  ;;  %v3516_v54 = vpop.permute.xlu0 %918 }
 0x170   :  { %1178 = vmatmul.mubr.bf16.gmra.mxu1 %v2603_v63 }
 0x171   :  { %1185 = vmatprep.mubr.bf16.mxu1 %v2604_v2  ;;  %v851_v23 = vpop.permute.xlu1 %850  ;;  %v855_v45 = vpop.permute.xlu0 %854 }
 0x175   :  { %v3518_v15 = vpop.permute.xlu1 %906  ;;  %v3520_v43 = vpop.permute.xlu0 %910 }
 0x178   :  { %1186 = vmatmul.mubr.bf16.gmra.mxu1 %v2606_v22 }
 0x179   :  { %1193 = vmatprep.mubr.bf16.mxu1 %v2607_v35  ;;  %v843_v0 = vpop.permute.xlu1 %842  ;;  %v847_v10 = vpop.permute.xlu0 %846 }
 0x17d   :  { %v3522_v38 = vpop.permute.xlu1 %898  ;;  %v3524_v3 = vpop.permute.xlu0 %902 }
 0x180   :  { %1194 = vmatmul.mubr.bf16.gmra.mxu1 %v2609_v32 }
 0x181   :  { %1201 = vmatprep.mubr.bf16.mxu1 %v2610_v5  ;;  %v835_v12 = vpop.permute.xlu1 %834  ;;  %v839_v37 = vpop.permute.xlu0 %838 }
 0x188   :  { %1202 = vmatmul.mubr.bf16.gmra.mxu1 %v2612_v52 }
 0x189   :  { %1209 = vmatprep.mubr.bf16.mxu1 %v2613_v50 }
 0x190   :  { %1210 = vmatmul.mubr.bf16.gmra.mxu1 %v2615_v28 }
 0x191   :  { %1217 = vmatprep.mubr.bf16.mxu1 %v2616_v51 }
 0x198   :  { %1218 = vmatmul.mubr.bf16.gmra.mxu1 %v2618_v36 }
 0x199   :  { %1225 = vmatprep.mubr.bf16.mxu1 %v2619_v48 }
 0x1a0   :  { %1226 = vmatmul.mubr.bf16.gmra.mxu1 %v2621_v62 }
 0x1a1   :  { %1233 = vmatprep.mubr.bf16.mxu1 %v2622_v7 }
 0x1a8   :  { %1234 = vmatmul.mubr.bf16.gmra.mxu1 %v2624_v25 }
 0x1a9   :  { %1241 = vmatprep.mubr.bf16.mxu1 %v2625_v4 }
 0x1b0   :  { %1242 = vmatmul.mubr.bf16.gmra.mxu1 %v2627_v27 }
 0x1b1   :  { %1249 = vmatprep.mubr.bf16.mxu1 %v2628_v14 }
 0x1b8   :  { %1250 = vmatmul.mubr.bf16.gmra.mxu1 %v2630_v39 }
 0x1b9   :  { %1257 = vmatprep.mubr.bf16.mxu1 %v2631_v8 }
 0x1c0   :  { %1258 = vmatmul.mubr.bf16.gmra.mxu1 %v2633_v59 }
 0x1c1   :  { %1265 = vmatprep.mubr.bf16.mxu1 %v2634_v6 }
 0x1c8   :  { %1266 = vmatmul.mubr.bf16.gmra.mxu1 %v2636_v42 }
 0x1c9   :  { %1273 = vmatprep.mubr.bf16.mxu1 %v2637_v30 }
 0x1d0   :  { %1274 = vmatmul.mubr.bf16.gmra.mxu1 %v2639_v49 }
 0x218   :  { %v2286_v31 = vpop.f32.mrf.mxu1 }
 0x21a   :  { %v2287_v29 = vpop.f32.mrf.mxu1 }
 0x21b   :  { %v2288_v17 = vadd.f32 %v2287_v29, %v2286_v31 }
 0x21c   :  { %v2289_v16 = vpop.f32.mrf.mxu1 }
 0x21d   :  { %v1156_v47 = vadd.f32 %v2288_v17, %v835_v12 }
 0x21e   :  { %v2290_v46 = vpop.f32.mrf.mxu1 }
 0x21f   :  { %v1282_v20 = vmul.f32 0.5, %v1156_v47  ;;  %v2291_v63 = vadd.f32 %v2290_v46, %v2289_v16 }
 0x220   :  { %v2292_v2 = vpop.f32.mrf.mxu1 }
 0x221   :  { %2754 = vtanh.f32 %v1282_v20  ;;  %v1159_v22 = vadd.f32 %v2291_v63, %v839_v37 }
 0x222   :  { %v2293_v35 = vpop.f32.mrf.mxu1 }
 0x223   :  { %v1283_v32 = vmul.f32 0.5, %v1159_v22  ;;  %v2294_v5 = vadd.f32 %v2293_v35, %v2292_v2 }
 0x224   :  { %v2295_v52 = vpop.f32.mrf.mxu1 }
 0x225   :  { %2756 = vtanh.f32 %v1283_v32  ;;  %v1164_v50 = vadd.f32 %v2294_v5, %v843_v0 }
 0x226   :  { %v2296_v28 = vpop.f32.mrf.mxu1 }
 0x227   :  { %v1284_v51 = vmul.f32 0.5, %v1164_v50  ;;  %v2297_v36 = vadd.f32 %v2296_v28, %v2295_v52 }
 0x228   :  { %v2298_v48 = vpop.f32.mrf.mxu1 }
 0x229   :  { %2758 = vtanh.f32 %v1284_v51  ;;  %v1167_v62 = vadd.f32 %v2297_v36, %v847_v10 }
 0x22a   :  { %v2299_v7 = vpop.f32.mrf.mxu1 }
 0x22b   :  { %v1285_v25 = vmul.f32 0.5, %v1167_v62  ;;  %v2300_v4 = vadd.f32 %v2299_v7, %v2298_v48 }
 0x22c   :  { %v2301_v27 = vpop.f32.mrf.mxu1 }
 0x22d   :  { %2760 = vtanh.f32 %v1285_v25  ;;  %v1172_v14 = vadd.f32 %v2300_v4, %v851_v23 }
 0x22e   :  { %v2755_v39 = vpop.eup %2754  ;;  %v2302_v8 = vpop.f32.mrf.mxu1 }
 0x22f   :  { %v1346_v59 = vmul.f32 0.5, %v2755_v39  ;;  %v1286_v6 = vmul.f32 0.5, %v1172_v14  ;;  %v2303_v42 = vadd.f32 %v2302_v8, %v2301_v27 }
 0x230   :  { %v2304_v30 = vpop.f32.mrf.mxu1 }
 0x231   :  { %2762 = vtanh.f32 %v1286_v6  ;;  %v1175_v49 = vadd.f32 %v2303_v42, %v855_v45  ;;  %v1378_v31 = vadd.f32 0.5, %v1346_v59 }
 0x232   :  { %v2757_v0 = vpop.eup %2756  ;;  %v2305_v29 = vpop.f32.mrf.mxu1 }
 0x233   :  { %v1347_v12 = vmul.f32 0.5, %v2757_v0  ;;  %v1287_v17 = vmul.f32 0.5, %v1175_v49  ;;  %v2306_v10 = vadd.f32 %v2305_v29, %v2304_v30  ;;  %v3528_v20 = vmul.f32 %v1378_v31, %v1156_v47  ;;  %v2902_v0 = vld [vmem:[#allocation8 + $0x38] sm:$0xff] }
 0x234   :  { %v2307_v16 = vpop.f32.mrf.mxu1 }
 0x235   :  { %v1379_v46 = vadd.f32 0.5, %v1347_v12  ;;  %2764 = vtanh.f32 %v1287_v17  ;;  %v3526_v37 = vadd.f32 %v2306_v10, %v859_v33 }
 0x236   :  { %v2759_v23 = vpop.eup %2758  ;;  %v2308_v63 = vpop.f32.mrf.mxu1 }
 0x237   :  { %v3530_v2 = vmul.f32 %v1379_v46, %v1159_v22  ;;  %v1348_v35 = vmul.f32 0.5, %v2759_v23  ;;  %v1288_v45 = vmul.f32 0.5, %v3526_v37  ;;  %v2309_v32 = vadd.f32 %v2308_v63, %v2307_v16 }
 0x238   :  { %v2310_v5 = vpop.f32.mrf.mxu1 }
 0x239   :  { %2766 = vtanh.f32 %v1288_v45  ;;  %v1183_v28 = vadd.f32 %v2309_v32, %v3512_v13  ;;  %v1380_v33 = vadd.f32 0.5, %v1348_v35 }
 0x23a   :  { %v2761_v51 = vpop.eup %2760  ;;  %v2311_v36 = vpop.f32.mrf.mxu1 }
 0x23b   :  { %v1349_v48 = vmul.f32 0.5, %v2761_v51  ;;  %v1289_v47 = vmul.f32 0.5, %v1183_v28  ;;  %v2312_v7 = vadd.f32 %v2311_v36, %v2310_v5  ;;  %v3539_v39 = vmul.f32 %v1380_v33, %v1164_v50 }
 0x23c   :  { %v2313_v25 = vpop.f32.mrf.mxu1 }
 0x23d   :  { %v1381_v22 = vadd.f32 0.5, %v1349_v48  ;;  %2768 = vtanh.f32 %v1289_v47  ;;  %v3537_v4 = vadd.f32 %v2312_v7, %v3504_v19 }
 0x23e   :  { %v2763_v27 = vpop.eup %2762  ;;  %v2314_v8 = vpop.f32.mrf.mxu1 }
 0x23f   :  { %v3541_v59 = vmul.f32 %v1381_v22, %v1167_v62  ;;  %v1350_v6 = vmul.f32 0.5, %v2763_v27  ;;  %v1290_v13 = vmul.f32 0.5, %v3537_v4  ;;  %v2315_v42 = vadd.f32 %v2314_v8, %v2313_v25 }
 0x240   :  { %v2316_v30 = vpop.f32.mrf.mxu1 }
 0x241   :  { %2770 = vtanh.f32 %v1290_v13  ;;  %v1191_v31 = vadd.f32 %v2315_v42, %v3506_v58  ;;  %v1382_v19 = vadd.f32 0.5, %v1350_v6 }
 0x242   :  { %v2765_v29 = vpop.eup %2764  ;;  %v2317_v12 = vpop.f32.mrf.mxu1 }
 0x243   :  { %v1351_v17 = vmul.f32 0.5, %v2765_v29  ;;  %v1291_v50 = vmul.f32 0.5, %v1191_v31  ;;  %v2318_v10 = vadd.f32 %v2317_v12, %v2316_v30  ;;  %v3550_v63 = vmul.f32 %v1382_v19, %v1172_v14  ;;  %v2642_v12 = vld [vmem:[#allocation5 + $0x10] ss:$20 sps:$4 sm:$0xff]  }
 0x244   :  { %v2319_v16 = vpop.f32.mrf.mxu1  ;;  %1778 = vmatprep.mubr.bf16.mxu0 %v2642_v12 }
 0x245   :  { %v1383_v62 = vadd.f32 0.5, %v1351_v17  ;;  %2772 = vtanh.f32 %v1291_v50  ;;  %v3548_v46 = vadd.f32 %v2318_v10, %v3496_v11  ;;  %v2906_v17 = vld [vmem:[#allocation8 + $0x28] sm:$0xff] }
 0x246   :  { %v2767_v23 = vpop.eup %2766  ;;  %v2320_v35 = vpop.f32.mrf.mxu1 }
 0x247   :  { %v3552_v45 = vmul.f32 %v1383_v62, %v1175_v49  ;;  %v1352_v32 = vmul.f32 0.5, %v2767_v23  ;;  %v1292_v58 = vmul.f32 0.5, %v3548_v46  ;;  %v2321_v5 = vadd.f32 %v2320_v35, %v2319_v16 }
 0x248   :  { %v2322_v51 = vpop.f32.mrf.mxu1 }
 0x249   :  { %2774 = vtanh.f32 %v1292_v58  ;;  %v3558_v36 = vadd.f32 %v2321_v5, %v3498_v61  ;;  %v1384_v48 = vadd.f32 0.5, %v1352_v32 }
 0x24a   :  { %v2769_v11 = vpop.eup %2768  ;;  %v2323_v47 = vpop.f32.mrf.mxu1 }
 0x24b   :  { %v1353_v14 = vmul.f32 0.5, %v2769_v11  ;;  %v1293_v7 = vmul.f32 0.5, %v3558_v36  ;;  %v2324_v49 = vadd.f32 %v2323_v47, %v2322_v51  ;;  %v3565_v6 = vmul.f32 %v1384_v48, %v3526_v37 }
 0x24c   :  { %v2325_v25 = vpop.f32.mrf.mxu1 }
 0x24d   :  { %v1385_v22 = vadd.f32 0.5, %v1353_v14  ;;  %2776 = vtanh.f32 %v1293_v7  ;;  %v3562_v27 = vadd.f32 %v2324_v49, %v3488_v9 }
 0x24e   :  { %v2771_v8 = vpop.eup %2770  ;;  %v2326_v13 = vpop.f32.mrf.mxu1 }
 0x24f   :  { %v3567_v61 = vmul.f32 %v1385_v22, %v1183_v28  ;;  %v1354_v42 = vmul.f32 0.5, %v2771_v8  ;;  %v1294_v30 = vmul.f32 0.5, %v3562_v27  ;;  %v2327_v29 = vadd.f32 %v2326_v13, %v2325_v25 }
 0x250   :  { %v2328_v19 = vpop.f32.mrf.mxu1 }
 0x251   :  { %2778 = vtanh.f32 %v1294_v30  ;;  %v3573_v9 = vadd.f32 %v2327_v29, %v3490_v40  ;;  %v1386_v10 = vadd.f32 0.5, %v1354_v42  ;;  %v3032_v29 = vmov 2  }
 0x252   :  { %v2773_v50 = vpop.eup %2772  ;;  %v2329_v37 = vpop.f32.mrf.mxu1  ;;  %2573 = vset.pattern.permute.xlu1 %v3032_v29  ;;  %2574 = vset.pattern.permute.xlu0 %v3032_v29 }
 0x253   :  { %v1355_v16 = vmul.f32 0.5, %v2773_v50  ;;  %v1295_v28 = vmul.f32 0.5, %v3573_v9  ;;  %v2330_v62 = vadd.f32 %v2329_v37, %v2328_v19  ;;  %v3580_v5 = vmul.f32 %v1386_v10, %v3537_v4  ;;  %v2882_v50 = vld [vmem:[#allocation8 + $0xf0] sm:$0xff]  ;;  %v2883_v10 = vld [vmem:[#allocation8 + $0xf8] sm:$0xff] }
 0x254   :  { %v2331_v23 = vpop.f32.mrf.mxu1  ;;  %1579 = vperm.xlu1 %2573, %v2882_v50   ;;  %1583 = vperm.xlu0 %2574, %v2883_v10  }
 0x255   :  { %v1387_v35 = vadd.f32 0.5, %v1355_v16  ;;  %2780 = vtanh.f32 %v1295_v28  ;;  %v3577_v32 = vadd.f32 %v2330_v62, %v3480_v41 }
 0x256   :  { %v2775_v58 = vpop.eup %2774  ;;  %v2332_v40 = vpop.f32.mrf.mxu1 }
 0x257   :  { %v3582_v51 = vmul.f32 %v1387_v35, %v1191_v31  ;;  %v1356_v11 = vmul.f32 0.5, %v2775_v58  ;;  %v1296_v48 = vmul.f32 0.5, %v3577_v32  ;;  %v2333_v47 = vadd.f32 %v2332_v40, %v2331_v23 }
 0x258   :  { %v2334_v14 = vpop.f32.mrf.mxu1 }
 0x259   :  { %2782 = vtanh.f32 %v1296_v48  ;;  %v3588_v49 = vadd.f32 %v2333_v47, %v3482_v56  ;;  %v1388_v25 = vadd.f32 0.5, %v1356_v11  ;;  %v2884_v11 = vld [vmem:[#allocation8 + $0x70] sm:$0xff]  ;;  %v2885_v48 = vld [vmem:[#allocation8 + $0xe0] sm:$0xff] }
 0x25a   :  { %v2777_v41 = vpop.eup %2776  ;;  %v2335_v22 = vpop.f32.mrf.mxu1  ;;  %1515 = vperm.xlu1 %2573, %v2884_v11   ;;  %1571 = vperm.xlu0 %2574, %v2885_v48  }
 0x25b   :  { %v1357_v4 = vmul.f32 0.5, %v2777_v41  ;;  %v1297_v8 = vmul.f32 0.5, %v3588_v49  ;;  %v2336_v31 = vadd.f32 %v2335_v22, %v2334_v14  ;;  %v3595_v56 = vmul.f32 %v1388_v25, %v3548_v46 }
 0x25c   :  { %v2337_v13 = vpop.f32.mrf.mxu1 }
 0x25d   :  { %v1389_v42 = vadd.f32 0.5, %v1357_v4  ;;  %2784 = vtanh.f32 %v1297_v8  ;;  %v3592_v30 = vadd.f32 %v2336_v31, %v3522_v38  ;;  %v2886_v31 = vld [vmem:[#allocation8 + $0x78] sm:$0xff] }
 0x25e   :  { %v2779_v19 = vpop.eup %2778  ;;  %v2338_v12 = vpop.f32.mrf.mxu1  ;;  %1519 = vperm.xlu1 %2573, %v2886_v31  }
 0x25f   :  { %v3598_v37 = vmul.f32 %v1389_v42, %v3558_v36  ;;  %v1358_v16 = vmul.f32 0.5, %v2779_v19  ;;  %v1298_v28 = vmul.f32 0.5, %v3592_v30  ;;  %v2339_v38 = vadd.f32 %v2338_v12, %v2337_v13  ;;  %v2887_v13 = vld [vmem:[#allocation8 + $0x60] sm:$0xff] }
 0x260   :  { %v2340_v62 = vpop.f32.mrf.mxu1  ;;  %1507 = vperm.xlu0 %2574, %v2887_v13   ;;  %v2892_v13 = vld [vmem:[#allocation8 + $0xd8] sm:$0xff] }
 0x261   :  { %2786 = vtanh.f32 %v1298_v28  ;;  %v3604_v46 = vadd.f32 %v2339_v38, %v3524_v3  ;;  %v1390_v58 = vadd.f32 0.5, %v1358_v16  ;;  %v2888_v28 = vld [vmem:[#allocation8 + $0xe8] sm:$0xff]  ;;  %v2889_v38 = vld [vmem:[#allocation8 + $0xd0] sm:$0xff] }
 0x262   :  { %v2781_v35 = vpop.eup %2780  ;;  %v2341_v40 = vpop.f32.mrf.mxu1  ;;  %1575 = vperm.xlu1 %2573, %v2888_v28  }
 0x263   :  { %v1359_v36 = vmul.f32 0.5, %v2781_v35  ;;  %v1299_v47 = vmul.f32 0.5, %v3604_v46  ;;  %v2342_v14 = vadd.f32 %v2341_v40, %v2340_v62  ;;  %v3611_v3 = vmul.f32 %v1390_v58, %v3562_v27 }
 0x264   :  { %v2343_v41 = vpop.f32.mrf.mxu1  ;;  %1563 = vperm.xlu0 %2574, %v2889_v38   ;;  %v2894_v38 = vld [vmem:[#allocation8 + $0x58] sm:$0xff] }
 0x265   :  { %v1391_v25 = vadd.f32 0.5, %v1359_v36  ;;  %2788 = vtanh.f32 %v1299_v47  ;;  %v3608_v22 = vadd.f32 %v2342_v14, %v3518_v15  ;;  %v2890_v36 = vld [vmem:[#allocation8 + $0x68] sm:$0xff] }
 0x266   :  { %v2783_v4 = vpop.eup %2782  ;;  %v2344_v8 = vpop.f32.mrf.mxu1  ;;  %1511 = vperm.xlu1 %2573, %v2890_v36  }
 0x267   :  { %v3614_v42 = vmul.f32 %v1391_v25, %v3573_v9  ;;  %v1360_v29 = vmul.f32 0.5, %v2783_v4  ;;  %v1300_v19 = vmul.f32 0.5, %v3608_v22  ;;  %v2345_v12 = vadd.f32 %v2344_v8, %v2343_v41 }
 0x268   :  { %v3617_v50 = vpop.f32.mrf.mxu1 }
 0x269   :  { %2790 = vtanh.f32 %v1300_v19  ;;  %v1231_v27 = vadd.f32 %v2345_v12, %v3520_v43  ;;  %v1392_v9 = vadd.f32 0.5, %v1360_v29  ;;  %v2891_v43 = vld [vmem:[#allocation8 + $0x50] sm:$0xff]  ;;  %v2893_v29 = vld [vmem:[#allocation8 + $0xc0] sm:$0xff] }
 0x26a   :  { %v2785_v10 = vpop.eup %2784  ;;  %v3622_v16 = vpop.f32.mrf.mxu1  ;;  %1499 = vperm.xlu0 %2574, %v2891_v43   ;;  %1567 = vperm.xlu1 %2573, %v2892_v13   ;;  %v2897_v13 = vld [vmem:[#allocation8 + $0xb0] sm:$0xff] }
 0x26b   :  { %v1361_v62 = vmul.f32 0.5, %v2785_v10  ;;  %v1301_v35 = vmul.f32 0.5, %v1231_v27  ;;  %v3629_v47 = vmul.f32 %v1392_v9, %v3577_v32  ;;  %v2895_v9 = vld [vmem:[#allocation8 + $0x40] sm:$0xff] }
 0x26c   :  { %v3624_v58 = vpop.f32.mrf.mxu1 }
 0x26d   :  { %v1393_v40 = vadd.f32 0.5, %v1361_v62  ;;  %2792 = vtanh.f32 %v1301_v35 }
 0x26e   :  { %v2787_v11 = vpop.eup %2786  ;;  %v3626_v48 = vpop.f32.mrf.mxu1  ;;  %1555 = vperm.xlu0 %2574, %v2893_v29   ;;  %1503 = vperm.xlu1 %2573, %v2894_v38  }
 0x26f   :  { %v3632_v14 = vmul.f32 %v1393_v40, %v3588_v49  ;;  %v1362_v41 = vmul.f32 0.5, %v2787_v11 }
 0x270   :  { %v3634_v25 = vpop.f32.mrf.mxu1 }
 0x271   :  { %v1394_v19 = vadd.f32 0.5, %v1362_v41 }
 0x272   :  { %v2789_v8 = vpop.eup %2788  ;;  %v3638_v31 = vpop.f32.mrf.mxu1  ;;  %1491 = vperm.xlu0 %2574, %v2895_v9   ;;  %v2898_v9 = vld [vmem:[#allocation8 + $0x48] sm:$0xff] }
 0x273   :  { %v1363_v12 = vmul.f32 0.5, %v2789_v8  ;;  %v3645_v62 = vmul.f32 %v1394_v19, %v3592_v30  ;;  %v2896_v8 = vld [vmem:[#allocation8 + $0xc8] sm:$0xff] }
 0x274   :  { %v3640_v32 = vpop.f32.mrf.mxu1  ;;  %1559 = vperm.xlu1 %2573, %v2896_v8  }
 0x275   :  { %v1395_v10 = vadd.f32 0.5, %v1363_v12 }
 0x276   :  { %v2791_v49 = vpop.eup %2790  ;;  %v3642_v28 = vpop.f32.mrf.mxu1  ;;  %1547 = vperm.xlu0 %2574, %v2897_v13   ;;  %v2900_v13 = vld [vmem:[#allocation8 + $0xb8] sm:$0xff] }
 0x277   :  { %v3648_v35 = vmul.f32 %v1395_v10, %v3604_v46  ;;  %v1364_v40 = vmul.f32 0.5, %v2791_v49  ;;  %v2899_v46 = vld [vmem:[#allocation8 + $0x30] sm:$0xff] }
 0x278   :  { %v3650_v11 = vpop.f32.mrf.mxu1  ;;  %1495 = vperm.xlu1 %2573, %v2898_v9   ;;  %v2903_v9 = vld [vmem:[#allocation8 + $0x20] sm:$0xff] }
 0x279   :  { %v1396_v29 = vadd.f32 0.5, %v1364_v40  ;;  %v2901_v40 = vld [vmem:[#allocation8 + $0xa0] sm:$0xff] }
 0x27a   :  { %v2793_v43 = vpop.eup %2792  ;;  %v2359_v41 = vpop.f32.mrf.mxu1  ;;  %1483 = vperm.xlu0 %2574, %v2899_v46  }
 0x27b   :  { %v1365_v12 = vmul.f32 0.5, %v2793_v43  ;;  %v3655_v10 = vmul.f32 %v1396_v29, %v3608_v22  ;;  %v2904_v29 = vld [vmem:[#allocation8 + $0xa8] sm:$0xff] }
 0x27c   :  { %v2361_v38 = vpop.f32.mrf.mxu1  ;;  %1551 = vperm.xlu1 %2573, %v2900_v13   ;;  %v2907_v13 = vld [vmem:[#allocation8 + $0x10] sm:$0xff] }
 0x27d   :  { %v1397_v30 = vadd.f32 0.5, %v1365_v12 }
 0x27e   :  { %v2362_v19 = vpop.f32.mrf.mxu1  ;;  %1539 = vperm.xlu0 %2574, %v2901_v40  }
 0x27f   :  { %v3657_v49 = vmul.f32 %v1397_v30, %v1231_v27  ;;  %v2905_v27 = vld [vmem:[#allocation8 + $0x90] sm:$0xff] }
 0x280   :  { %v2364_v52 = vpop.f32.mrf.mxu1  ;;  %1487 = vperm.xlu1 %2573, %v2902_v0  }
 0x282   :  { %v2365_v36 = vpop.f32.mrf.mxu1  ;;  %1475 = vperm.xlu0 %2574, %v2903_v9  }
 0x283   :  { %v2366_v23 = vadd.f32 %v2365_v36, %v2364_v52 }
 0x284   :  { %v2367_v43 = vpop.f32.mrf.mxu1  ;;  %1543 = vperm.xlu1 %2573, %v2904_v29   ;;  %v2363_v29 = vadd.f32 %v2362_v19, %v2361_v38  ;;  %v2357_v38 = vadd.f32 %v3642_v28, %v3640_v32  ;;  %v2354_v32 = vadd.f32 %v3638_v31, %v3634_v25  ;;  %v2913_v31 = vld [vmem:[#allocation8 + $0x8] sm:$0xff] }
 0x285   :  { %v3672_v52 = vadd.f32 %v2366_v23, %v3492_v60 }
 0x286   :  { %v2368_v12 = vpop.f32.mrf.mxu1  ;;  %1531 = vperm.xlu0 %2574, %v2905_v27   ;;  %v2908_v27 = vld [vmem:[#allocation8 + $0x98] sm:$0xff]  ;;  %v3702_v25 = vadd.f32 %v2354_v32, %v3508_v1 }
 0x287   :  { %v2369_v40 = vadd.f32 %v2368_v12, %v2367_v43  ;;  %v2912_v12 = vld [vmem:[#allocation8 + $0x88] sm:$0xff] }
 0x288   :  { %v2370_v46 = vpop.f32.mrf.mxu1  ;;  %1479 = vperm.xlu1 %2573, %v2906_v17  }
 0x289   :  { %v3668_v17 = vadd.f32 %v2369_v40, %v3494_v55  ;;  %v3682_v55 = vadd.f32 %v2363_v29, %v3502_v26  ;;  %v1304_v40 = vmul.f32 0.5, %v3702_v25 }
 0x28a   :  { %v2371_v22 = vpop.f32.mrf.mxu1  ;;  %1467 = vperm.xlu0 %2574, %v2907_v13  }
 0x28b   :  { %v2372_v30 = vadd.f32 %v2371_v22, %v2370_v46  ;;  %v2909_v46 = vld [vmem:[#allocation8 + $0x80] sm:$0xff]  ;;  %v1309_v60 = vmul.f32 0.5, %v3668_v17  ;;  %v2351_v22 = vadd.f32 %v3626_v48, %v3624_v58 }
 0x28c   :  { %v2373_v33 = vpop.f32.mrf.mxu1  ;;  %1535 = vperm.xlu1 %2573, %v2908_v27  }
 0x28d   :  { %v3662_v0 = vadd.f32 %v2372_v30, %v3484_v57  ;;  %v3697_v30 = vadd.f32 %v2357_v38, %v3510_v21  ;;  %v3706_v58 = vadd.f32 %v2351_v22, %v3516_v54 }
 0x28e   :  { %v2374_v8 = vpop.f32.mrf.mxu1  ;;  %1523 = vperm.xlu0 %2574, %v2909_v46  }
 0x28f   :  { %v2375_v7 = vadd.f32 %v2374_v8, %v2373_v33  ;;  %v1310_v57 = vmul.f32 0.5, %v3662_v0  ;;  %v2910_v8 = vld [vmem:[#allocation8 + $0x18] sm:$0xff]  ;;  %v1305_v21 = vmul.f32 0.5, %v3697_v30  ;;  %v1303_v1 = vmul.f32 0.5, %v3706_v58 }
 0x290   :  { %v2376_v9 = vpop.f32.mrf.mxu1  ;;  %1471 = vperm.xlu1 %2573, %v2910_v8  }
 0x291   :  { %v3665_v15 = vadd.f32 %v2375_v7, %v3486_v24  ;;  %v2360_v24 = vadd.f32 %v2359_v41, %v3650_v11  ;;  %v1307_v41 = vmul.f32 0.5, %v3682_v55 }
 0x292   :  { %v2377_v4 = vpop.f32.mrf.mxu1 }
 0x293   :  { %v1311_v43 = vmul.f32 0.5, %v3665_v15  ;;  %v2378_v33 = vadd.f32 %v2377_v4, %v2376_v9  ;;  %v2911_v4 = vld [vmem:[#allocation8] sm:$0xff]  ;;  %v3690_v26 = vadd.f32 %v2360_v24, %v3500_v18  ;;  %v2348_v18 = vadd.f32 %v3622_v16, %v3617_v50 }
 0x294   :  { %v2379_v36 = vpop.f32.mrf.mxu1  ;;  %1459 = vperm.xlu0 %2574, %v2911_v4   ;;  %1527 = vperm.xlu1 %2573, %v2912_v12  }
 0x295   :  { %v3677_v7 = vadd.f32 %v2378_v33, %v3478_v44  ;;  %2794 = vtanh.f32 %v1311_v43  ;;  %v1308_v44 = vmul.f32 0.5, %v3672_v52  ;;  %v3710_v48 = vadd.f32 %v2348_v18, %v3514_v34 }
 0x296   :  { %v2380_v19 = vpop.f32.mrf.mxu1  ;;  %2796 = vtanh.f32 %v1310_v57 }
 0x297   :  { %v1312_v23 = vmul.f32 0.5, %v3677_v7  ;;  %v2381_v11 = vadd.f32 %v2380_v19, %v2379_v36  ;;  %v1302_v9 = vmul.f32 0.5, %v3710_v48 }
 0x298   :  { %1463 = vperm.xlu1 %2573, %v2913_v31  }
 0x299   :  { %2798 = vtanh.f32 %v1312_v23  ;;  %v1279_v28 = vadd.f32 %v2381_v11, %v3476_v53  ;;  %v1306_v53 = vmul.f32 0.5, %v3690_v26 }
 0x29a   :  { %2800 = vtanh.f32 %v1309_v60 }
 0x29b   :  { %v1313_v13 = vmul.f32 0.5, %v1279_v28  ;;  %2802 = vtanh.f32 %v1308_v44 }
 0x29d   :  { %2804 = vtanh.f32 %v1313_v13 }
 0x29e   :  { %2806 = vtanh.f32 %v1307_v41 }
 0x29f   :  { %2808 = vtanh.f32 %v1306_v53 }
 0x2a0   :  { %2810 = vtanh.f32 %v1305_v21 }
 0x2a1   :  { %2812 = vtanh.f32 %v1304_v40 }
 0x2a2   :  { %v2795_v50 = vpop.eup %2794  ;;  %2814 = vtanh.f32 %v1303_v1 }
 0x2a3   :  { %v2797_v16 = vpop.eup %2796  ;;  %v1375_v54 = vmul.f32 0.5, %v2795_v50  ;;  %2816 = vtanh.f32 %v1302_v9 }
 0x2a4   :  { %v1374_v34 = vmul.f32 0.5, %v2797_v16 }
 0x2a5   :  { %v1407_v24 = vadd.f32 0.5, %v1375_v54 }
 0x2a6   :  { %v2799_v29 = vpop.eup %2798  ;;  %v1406_v4 = vadd.f32 0.5, %v1374_v34 }
 0x2a7   :  { %v1376_v27 = vmul.f32 0.5, %v2799_v29  ;;  %v2801_v46 = vpop.eup %2800  ;;  %v1439_v32 = vmul.f32 %v1407_v24, %v3665_v15  ;;  %v4051_v15 = vpack.c.bf16 %v3632_v14, %v3629_v47 }
 0x2a8   :  { %v2803_v43 = vpop.eup %2802  ;;  %v1373_v36 = vmul.f32 0.5, %v2801_v46  ;;  %v1438_v53 = vmul.f32 %v1406_v4, %v3662_v0  ;;  %v2664_v4 = vld [vmem:[#allocation5 + $0x150] ss:$20 sps:$4 sm:$0xff]  }
 0x2a9   :  { %v1408_v38 = vadd.f32 0.5, %v1376_v27  ;;  %v1372_v8 = vmul.f32 0.5, %v2803_v43 }
 0x2aa   :  { %v2805_v33 = vpop.eup %2804  ;;  %v1405_v44 = vadd.f32 0.5, %v1373_v36  ;;  %v1456_v16 = vpack.c.bf16 %v1439_v32, %v1438_v53  ;;  %v4053_v36 = vpack.c.bf16 %v3598_v37, %v3595_v56  ;;  %v4056_v56 = vpack.c.bf16 %v3552_v45, %v3550_v63  ;;  %v2645_v63 = vld [vmem:[#allocation5 + $0x34] ss:$20 sps:$4 sm:$0xff]   ;;  %v2672_v32 = vld [vmem:[#allocation5 + $0x19c] ss:$20 sps:$4 sm:$0xff]  }
 0x2ab   :  { %v2807_v57 = vpop.eup %2806  ;;  %v1377_v19 = vmul.f32 0.5, %v2805_v33  ;;  %v1440_v41 = vmul.f32 %v1408_v38, %v3677_v7  ;;  %v1404_v18 = vadd.f32 0.5, %v1372_v8  ;;  %v4054_v38 = vpack.c.bf16 %v3582_v51, %v3580_v5  ;;  %v2646_v45 = vld [vmem:[#allocation5 + $0x60] ss:$20 sps:$4 sm:$0xff]   ;;  %v2663_v8 = vld [vmem:[#allocation5 + $0x124] ss:$20 sps:$4 sm:$0xff]  }
 0x2ac   :  { %v2809_v23 = vpop.eup %2808  ;;  %v1371_v11 = vmul.f32 0.5, %v2807_v57  ;;  %v1437_v50 = vmul.f32 %v1405_v44, %v3668_v17  ;;  %v4052_v17 = vpack.c.bf16 %v3614_v42, %v3611_v3  ;;  %v4057_v37 = vpack.c.bf16 %v3657_v49, %v3655_v10  ;;  %v2648_v10 = vld [vmem:[#allocation5 + $0x5c] ss:$20 sps:$4 sm:$0xff]   ;;  %v2670_v44 = vld [vmem:[#allocation5 + $0x1a0] ss:$20 sps:$4 sm:$0xff]  }
 0x2ad   :  { %v1409_v60 = vadd.f32 0.5, %v1377_v19  ;;  %v2811_v22 = vpop.eup %2810  ;;  %v1370_v13 = vmul.f32 0.5, %v2809_v23  ;;  %v1436_v29 = vmul.f32 %v1404_v18, %v3672_v52  ;;  %v4055_v19 = vpack.c.bf16 %v3567_v61, %v3565_v6  ;;  %v2643_v61 = vld [vmem:[#allocation5 + $0x38] ss:$20 sps:$4 sm:$0xff]   ;;  %v2649_v49 = vld [vmem:[#allocation5 + $0x88] ss:$20 sps:$4 sm:$0xff]  }
 0x2ae   :  { %v2813_v21 = vpop.eup %2812  ;;  %v1369_v40 = vmul.f32 0.5, %v2811_v22  ;;  %v1403_v1 = vadd.f32 0.5, %v1371_v11  ;;  %v4058_v5 = vpack.c.bf16 %v3541_v59, %v3539_v39  ;;  %v4059_v51 = vpack.c.bf16 %v3648_v35, %v3645_v62  ;;  %v2651_v39 = vld [vmem:[#allocation5 + $0x84] ss:$20 sps:$4 sm:$0xff]   ;;  %v2654_v62 = vld [vmem:[#allocation5 + $0xac] ss:$20 sps:$4 sm:$0xff]  }
 0x2af   :  { %v1441_v12 = vmul.f32 %v1409_v60, %v1279_v28  ;;  %v2815_v9 = vpop.eup %2814  ;;  %v1368_v7 = vmul.f32 0.5, %v2813_v21  ;;  %v1402_v28 = vadd.f32 0.5, %v1370_v13  ;;  %v1455_v43 = vpack.c.bf16 %v1437_v50, %v1436_v29  ;;  %v2652_v59 = vld [vmem:[#allocation5 + $0xb0] ss:$20 sps:$4 sm:$0xff]   ;;  %v2655_v35 = vld [vmem:[#allocation5 + $0xd8] ss:$20 sps:$4 sm:$0xff]  }
 0x2b0   :  { %v2817_v54 = vpop.eup %2816  ;;  %v1367_v0 = vmul.f32 0.5, %v2815_v9  ;;  %v1401_v27 = vadd.f32 0.5, %v1369_v40  ;;  %v1435_v46 = vmul.f32 %v1403_v1, %v3682_v55  ;;  %v4060_v6 = vpack.c.bf16 %v3530_v2, %v3528_v20  ;;  %v2657_v20 = vld [vmem:[#allocation5 + $0xd4] ss:$20 sps:$4 sm:$0xff]   ;;  %v2666_v60 = vld [vmem:[#allocation5 + $0x14c] ss:$20 sps:$4 sm:$0xff]  }
 0x2b1   :  { %v1457_v31 = vpack.c.bf16 %v1441_v12, %v1440_v41  ;;  %v1366_v34 = vmul.f32 0.5, %v2817_v54  ;;  %v1400_v33 = vadd.f32 0.5, %v1368_v7  ;;  %v1434_v47 = vmul.f32 %v1402_v28, %v3690_v26  ;;  %v2658_v2 = vld [vmem:[#allocation5 + $0x100] ss:$20 sps:$4 sm:$0xff]   ;;  %v2667_v23 = vld [vmem:[#allocation5 + $0x178] ss:$20 sps:$4 sm:$0xff]  }
 0x2b2   :  { %v1399_v14 = vadd.f32 0.5, %v1367_v0  ;;  %v1433_v57 = vmul.f32 %v1401_v27, %v3697_v30  ;;  %v2669_v11 = vld [vmem:[#allocation5 + $0x174] ss:$20 sps:$4 sm:$0xff]   ;;  %v2675_v12 = vld [vmem:[#allocation5 + $0x1c4] ss:$20 sps:$4 sm:$0xff]  }
 0x2b3   :  { %2382 = vmatprep.subr.bf16.mxu0 %v1457_v31  ;;  %v1454_v52 = vpack.c.bf16 %v1435_v46, %v1434_v47  ;;  %v1398_v24 = vadd.f32 0.5, %v1366_v34  ;;  %v1432_v55 = vmul.f32 %v1400_v33, %v3702_v25  ;;  %v2640_v25 = vld [vmem:[#allocation5 + $0xc] ss:$20 sps:$4 sm:$0xff]   ;;  %v2673_v41 = vld [vmem:[#allocation5 + $0x1c8] ss:$20 sps:$4 sm:$0xff]  }
 0x2b4   :  { %2383 = vmatpush3.bf16.msra.mxu0 %v4051_v15  ;;  %v1431_v3 = vmul.f32 %v1399_v14, %v3706_v58  ;;  %v2660_v58 = vld [vmem:[#allocation5 + $0xfc] ss:$20 sps:$4 sm:$0xff]   ;;  %v2678_v13 = vld [vmem:[#allocation5 + $0x1ec] ss:$20 sps:$4 sm:$0xff]   ;;  %v2681_v53 = vld [vmem:[#allocation5 + $0x214] ss:$20 sps:$4 sm:$0xff]  }
 0x2b5   :  { %2384 = vmatprep.subr.bf16.mxu0 %v1456_v16  ;;  %v1453_v42 = vpack.c.bf16 %v1433_v57, %v1432_v55  ;;  %v1430_v26 = vmul.f32 %v1398_v24, %v3710_v48  ;;  %v2661_v48 = vld [vmem:[#allocation5 + $0x128] ss:$20 sps:$4 sm:$0xff]   ;;  %v2676_v22 = vld [vmem:[#allocation5 + $0x1f0] ss:$20 sps:$4 sm:$0xff]   ;;  %v2679_v18 = vld [vmem:[#allocation5 + $0x218] ss:$20 sps:$4 sm:$0xff]  }
 0x2b6   :  { %v2682_v31 = vld [vmem:[#allocation5 + $0x240] ss:$20 sps:$4 sm:$0xff]   ;;  %v2684_v40 = vld [vmem:[#allocation5 + $0x23c] ss:$20 sps:$4 sm:$0xff]   ;;  %v2687_v15 = vld [vmem:[#allocation5 + $0x264] ss:$20 sps:$4 sm:$0xff]  }
 0x2b7   :  { %v1452_v30 = vpack.c.bf16 %v1431_v3, %v1430_v26  ;;  %v2685_v50 = vld [vmem:[#allocation5 + $0x268] ss:$20 sps:$4 sm:$0xff]  }
 0x2b8   :  { %2385 = vmatpush3.bf16.msra.mxu0 %v4052_v17 }
 0x2b9   :  { %2386 = vmatprep.subr.bf16.mxu0 %v1455_v43 }
 0x2bc   :  { %2387 = vmatpush3.bf16.msra.mxu0 %v4053_v36 }
 0x2bd   :  { %2388 = vmatprep.subr.bf16.mxu0 %v1454_v52 }
 0x2c0   :  { %2389 = vmatpush3.bf16.msra.mxu0 %v4054_v38 }
 0x2c1   :  { %2390 = vmatprep.subr.bf16.mxu0 %v1453_v42 }
 0x2c4   :  { %2391 = vmatpush3.bf16.msra.mxu0 %v4055_v19 }
 0x2c5   :  { %2392 = vmatprep.subr.bf16.mxu0 %v1452_v30 }
 0x2c8   :  { %2393 = vmatpush3.bf16.msra.mxu0 %v4056_v56 }
 0x2c9   :  { %2394 = vmatprep.subr.bf16.mxu0 %v4057_v37 }
 0x2cc   :  { %2395 = vmatpush3.bf16.msra.mxu0 %v4058_v5 }
 0x2cd   :  { %2396 = vmatprep.subr.bf16.mxu0 %v4059_v51 }
 0x2cf   :  { %v3756_v21 = vpop.permute.xlu1 %1579  ;;  %v3760_v16 = vpop.permute.xlu0 %1583 }
 0x2d0   :  { %2397 = vmatpush3.bf16.msra.mxu0 %v4060_v6 }
 0x2d3   :  { %1779 = vmatmul.mubr.bf16.vlgmr.msra.gmra.mxu0 %v2640_v25 }
 0x2d4   :  { %1786 = vmatprep.mubr.bf16.mxu0 %v2643_v61 }
 0x2d5   :  { %v3758_v1 = vpop.permute.xlu1 %1515  ;;  %v3764_v7 = vpop.permute.xlu0 %1571 }
 0x2d9   :  { %v3762_v9 = vpop.permute.xlu1 %1519 }
 0x2db   :  { %1787 = vmatmul.mubr.bf16.gmra.mxu0 %v2645_v63  ;;  %v3768_v29 = vpop.permute.xlu0 %1507 }
 0x2dc   :  { %1794 = vmatprep.mubr.bf16.mxu0 %v2646_v45 }
 0x2dd   :  { %v3766_v28 = vpop.permute.xlu1 %1575 }
 0x2df   :  { %v3772_v0 = vpop.permute.xlu0 %1563 }
 0x2e1   :  { %v3770_v54 = vpop.permute.xlu1 %1511 }
 0x2e3   :  { %1795 = vmatmul.mubr.bf16.gmra.mxu0 %v2648_v10 }
 0x2e4   :  { %1802 = vmatprep.mubr.bf16.mxu0 %v2649_v49 }
 0x2e5   :  { %v3774_v27 = vpop.permute.xlu1 %1567  ;;  %v3776_v46 = vpop.permute.xlu0 %1499 }
 0x2e9   :  { %v3778_v43 = vpop.permute.xlu1 %1503  ;;  %v3780_v17 = vpop.permute.xlu0 %1555 }
 0x2eb   :  { %1803 = vmatmul.mubr.bf16.gmra.mxu0 %v2651_v39 }
 0x2ec   :  { %1810 = vmatprep.mubr.bf16.mxu0 %v2652_v59 }
 0x2ed   :  { %v3784_v33 = vpop.permute.xlu0 %1491 }
 0x2ef   :  { %v3782_v34 = vpop.permute.xlu1 %1559 }
 0x2f1   :  { %v3788_v14 = vpop.permute.xlu0 %1547 }
 0x2f3   :  { %1811 = vmatmul.mubr.bf16.gmra.mxu0 %v2654_v62  ;;  %v3786_v47 = vpop.permute.xlu1 %1495 }
 0x2f4   :  { %1818 = vmatprep.mubr.bf16.mxu0 %v2655_v35 }
 0x2f5   :  { %v1484_v52 = vpop.permute.xlu0 %1483 }
 0x2f7   :  { %v3790_v57 = vpop.permute.xlu1 %1551 }
 0x2f9   :  { %v3794_v24 = vpop.permute.xlu0 %1539 }
 0x2fb   :  { %1819 = vmatmul.mubr.bf16.gmra.mxu0 %v2657_v20  ;;  %v3792_v36 = vpop.permute.xlu1 %1487 }
 0x2fc   :  { %1826 = vmatprep.mubr.bf16.mxu0 %v2658_v2 }
 0x2fd   :  { %v1476_v3 = vpop.permute.xlu0 %1475 }
 0x2ff   :  { %v3796_v55 = vpop.permute.xlu1 %1543 }
 0x301   :  { %v3798_v38 = vpop.permute.xlu0 %1531 }
 0x303   :  { %1827 = vmatmul.mubr.bf16.gmra.mxu0 %v2660_v58  ;;  %v1480_v42 = vpop.permute.xlu1 %1479 }
 0x304   :  { %1834 = vmatprep.mubr.bf16.mxu0 %v2661_v48 }
 0x305   :  { %v1468_v30 = vpop.permute.xlu0 %1467 }
 0x307   :  { %v3800_v26 = vpop.permute.xlu1 %1535 }
 0x309   :  { %v3802_v56 = vpop.permute.xlu0 %1523 }
 0x30b   :  { %1835 = vmatmul.mubr.bf16.gmra.mxu0 %v2663_v8  ;;  %v1472_v19 = vpop.permute.xlu1 %1471 }
 0x30c   :  { %1842 = vmatprep.mubr.bf16.mxu0 %v2664_v4 }
 0x30f   :  { %v3804_v5 = vpop.permute.xlu1 %1527  ;;  %v1460_v25 = vpop.permute.xlu0 %1459 }
 0x313   :  { %1843 = vmatmul.mubr.bf16.gmra.mxu0 %v2666_v60  ;;  %v1464_v10 = vpop.permute.xlu1 %1463 }
 0x314   :  { %1850 = vmatprep.mubr.bf16.mxu0 %v2667_v23 }
 0x31b   :  { %1851 = vmatmul.mubr.bf16.gmra.mxu0 %v2669_v11 }
 0x31c   :  { %1858 = vmatprep.mubr.bf16.mxu0 %v2670_v44 }
 0x323   :  { %1859 = vmatmul.mubr.bf16.gmra.mxu0 %v2672_v32 }
 0x324   :  { %1866 = vmatprep.mubr.bf16.mxu0 %v2673_v41 }
 0x32b   :  { %1867 = vmatmul.mubr.bf16.gmra.mxu0 %v2675_v12 }
 0x32c   :  { %1874 = vmatprep.mubr.bf16.mxu0 %v2676_v22 }
 0x333   :  { %1875 = vmatmul.mubr.bf16.gmra.mxu0 %v2678_v13 }
 0x334   :  { %1882 = vmatprep.mubr.bf16.mxu0 %v2679_v18 }
 0x33b   :  { %1883 = vmatmul.mubr.bf16.gmra.mxu0 %v2681_v53 }
 0x33c   :  { %1890 = vmatprep.mubr.bf16.mxu0 %v2682_v31 }
 0x343   :  { %1891 = vmatmul.mubr.bf16.gmra.mxu0 %v2684_v40 }
 0x344   :  { %1898 = vmatprep.mubr.bf16.mxu0 %v2685_v50 }
 0x34b   :  { %1899 = vmatmul.mubr.bf16.gmra.mxu0 %v2687_v15 }
 0x393   :  { %v2398_v37 = vpop.f32.mrf.mxu0 }
 0x395   :  { %v2399_v51 = vpop.f32.mrf.mxu0 }
 0x396   :  { %v2400_v6 = vadd.f32 %v2399_v51, %v2398_v37 }
 0x397   :  { %v2401_v61 = vpop.f32.mrf.mxu0 }
 0x398   :  { %v1781_v63 = vadd.f32 %v2400_v6, %v1460_v25 }
 0x399   :  { %v2402_v45 = vpop.f32.mrf.mxu0 }
 0x39a   :  { %v1907_v49 = vmul.f32 0.5, %v1781_v63  ;;  %v2403_v39 = vadd.f32 %v2402_v45, %v2401_v61 }
 0x39b   :  { %v2404_v59 = vpop.f32.mrf.mxu0 }
 0x39c   :  { %2818 = vtanh.f32 %v1907_v49  ;;  %v1784_v62 = vadd.f32 %v2403_v39, %v1464_v10 }
 0x39d   :  { %v2405_v35 = vpop.f32.mrf.mxu0 }
 0x39e   :  { %v1908_v20 = vmul.f32 0.5, %v1784_v62  ;;  %v2406_v2 = vadd.f32 %v2405_v35, %v2404_v59 }
 0x39f   :  { %v2407_v58 = vpop.f32.mrf.mxu0 }
 0x3a0   :  { %2820 = vtanh.f32 %v1908_v20  ;;  %v1789_v48 = vadd.f32 %v2406_v2, %v1468_v30 }
 0x3a1   :  { %v2408_v8 = vpop.f32.mrf.mxu0 }
 0x3a2   :  { %v1909_v4 = vmul.f32 0.5, %v1789_v48  ;;  %v2409_v60 = vadd.f32 %v2408_v8, %v2407_v58 }
 0x3a3   :  { %v2410_v23 = vpop.f32.mrf.mxu0 }
 0x3a4   :  { %2822 = vtanh.f32 %v1909_v4  ;;  %v1792_v11 = vadd.f32 %v2409_v60, %v1472_v19 }
 0x3a5   :  { %v2411_v44 = vpop.f32.mrf.mxu0 }
 0x3a6   :  { %v1910_v32 = vmul.f32 0.5, %v1792_v11  ;;  %v2412_v41 = vadd.f32 %v2411_v44, %v2410_v23 }
 0x3a7   :  { %v2413_v12 = vpop.f32.mrf.mxu0 }
 0x3a8   :  { %2824 = vtanh.f32 %v1910_v32  ;;  %v1797_v22 = vadd.f32 %v2412_v41, %v1476_v3 }
 0x3a9   :  { %v2819_v13 = vpop.eup %2818  ;;  %v2414_v18 = vpop.f32.mrf.mxu0 }
 0x3aa   :  { %v1971_v53 = vmul.f32 0.5, %v2819_v13  ;;  %v1911_v31 = vmul.f32 0.5, %v1797_v22  ;;  %v2415_v40 = vadd.f32 %v2414_v18, %v2413_v12 }
 0x3ab   :  { %v2416_v50 = vpop.f32.mrf.mxu0 }
 0x3ac   :  { %2826 = vtanh.f32 %v1911_v31  ;;  %v1800_v15 = vadd.f32 %v2415_v40, %v1480_v42  ;;  %v2003_v37 = vadd.f32 0.5, %v1971_v53 }
 0x3ad   :  { %v2821_v30 = vpop.eup %2820  ;;  %v2417_v51 = vpop.f32.mrf.mxu0 }
 0x3ae   :  { %v1972_v25 = vmul.f32 0.5, %v2821_v30  ;;  %v1912_v6 = vmul.f32 0.5, %v1800_v15  ;;  %v2418_v19 = vadd.f32 %v2417_v51, %v2416_v50  ;;  %v3808_v49 = vmul.f32 %v2003_v37, %v1781_v63 }
 0x3af   :  { %v2419_v61 = vpop.f32.mrf.mxu0 }
 0x3b0   :  { %v2004_v45 = vadd.f32 0.5, %v1972_v25  ;;  %2828 = vtanh.f32 %v1912_v6  ;;  %v3806_v10 = vadd.f32 %v2418_v19, %v1484_v52 }
 0x3b1   :  { %v2823_v3 = vpop.eup %2822  ;;  %v2420_v39 = vpop.f32.mrf.mxu0 }
 0x3b2   :  { %v3810_v59 = vmul.f32 %v2004_v45, %v1784_v62  ;;  %v1973_v35 = vmul.f32 0.5, %v2823_v3  ;;  %v1913_v42 = vmul.f32 0.5, %v3806_v10  ;;  %v2421_v20 = vadd.f32 %v2420_v39, %v2419_v61 }
 0x3b3   :  { %v2422_v2 = vpop.f32.mrf.mxu0 }
 0x3b4   :  { %2830 = vtanh.f32 %v1913_v42  ;;  %v1808_v8 = vadd.f32 %v2421_v20, %v3792_v36  ;;  %v2005_v52 = vadd.f32 0.5, %v1973_v35 }
 0x3b5   :  { %v2825_v4 = vpop.eup %2824  ;;  %v2423_v60 = vpop.f32.mrf.mxu0 }
 0x3b6   :  { %v1974_v23 = vmul.f32 0.5, %v2825_v4  ;;  %v1914_v63 = vmul.f32 0.5, %v1808_v8  ;;  %v2424_v44 = vadd.f32 %v2423_v60, %v2422_v2  ;;  %v3819_v13 = vmul.f32 %v2005_v52, %v1789_v48 }
 0x3b7   :  { %v2425_v32 = vpop.f32.mrf.mxu0 }
 0x3b8   :  { %v2006_v62 = vadd.f32 0.5, %v1974_v23  ;;  %2832 = vtanh.f32 %v1914_v63  ;;  %v3817_v41 = vadd.f32 %v2424_v44, %v3784_v33 }
 0x3b9   :  { %v2827_v12 = vpop.eup %2826  ;;  %v2426_v18 = vpop.f32.mrf.mxu0 }
 0x3ba   :  { %v3821_v53 = vmul.f32 %v2006_v62, %v1792_v11  ;;  %v1975_v31 = vmul.f32 0.5, %v2827_v12  ;;  %v1915_v36 = vmul.f32 0.5, %v3817_v41  ;;  %v2427_v40 = vadd.f32 %v2426_v18, %v2425_v32 }
 0x3bb   :  { %v2428_v50 = vpop.f32.mrf.mxu0 }
 0x3bc   :  { %2834 = vtanh.f32 %v1915_v36  ;;  %v3827_v37 = vadd.f32 %v2427_v40, %v3786_v47  ;;  %v2007_v51 = vadd.f32 0.5, %v1975_v31 }
 0x3bd   :  { %v2829_v33 = vpop.eup %2828  ;;  %v2429_v25 = vpop.f32.mrf.mxu0 }
 0x3be   :  { %v1976_v48 = vmul.f32 0.5, %v2829_v33  ;;  %v1916_v6 = vmul.f32 0.5, %v3827_v37  ;;  %v2430_v11 = vadd.f32 %v2429_v25, %v2428_v50  ;;  %v3833_v39 = vmul.f32 %v2007_v51, %v1797_v22  ;;  %v3853_v25 = vld [vmem:[#allocation7] sm:$0xff] }
 0x3bf   :  { %v2431_v19 = vpop.f32.mrf.mxu0 }
 0x3c0   :  { %v2008_v61 = vadd.f32 0.5, %v1976_v48  ;;  %2836 = vtanh.f32 %v1916_v6  ;;  %v3831_v45 = vadd.f32 %v2430_v11, %v3776_v46 }
 0x3c1   :  { %v2831_v3 = vpop.eup %2830  ;;  %v2432_v35 = vpop.f32.mrf.mxu0 }
 0x3c2   :  { %v3835_v42 = vmul.f32 %v2008_v61, %v1800_v15  ;;  %v1977_v47 = vmul.f32 0.5, %v2831_v3  ;;  %v1917_v20 = vmul.f32 0.5, %v3831_v45  ;;  %v2433_v2 = vadd.f32 %v2432_v35, %v2431_v19  ;;  %v206_v35 = vld [vmem:[#allocation8] sm:$0xff] }
 0x3c3   :  { %v2434_v4 = vpop.f32.mrf.mxu0 }
 0x3c4   :  { %2838 = vtanh.f32 %v1917_v20  ;;  %v3841_v60 = vadd.f32 %v2433_v2, %v3778_v43  ;;  %v2009_v23 = vadd.f32 0.5, %v1977_v47 }
 0x3c5   :  { %v2833_v46 = vpop.eup %2832  ;;  %v2435_v63 = vpop.f32.mrf.mxu0 }
 0x3c6   :  { %v1978_v22 = vmul.f32 0.5, %v2833_v46  ;;  %v1918_v44 = vmul.f32 0.5, %v3841_v60  ;;  %v2436_v15 = vadd.f32 %v2435_v63, %v2434_v4  ;;  %v3848_v31 = vmul.f32 %v2009_v23, %v3806_v10 }
 0x3c7   :  { %v2437_v32 = vpop.f32.mrf.mxu0  ;;  %v3033_v4 = vmov 3  }
 0x3c8   :  { %v2010_v62 = vadd.f32 0.5, %v1978_v22  ;;  %2840 = vtanh.f32 %v1918_v44  ;;  %v3845_v12 = vadd.f32 %v2436_v15, %v3768_v29  ;;  %2575 = vset.pattern.permute.xlu0 %v3033_v4 }
 0x3c9   :  { %v2835_v18 = vpop.eup %2834  ;;  %v2438_v36 = vpop.f32.mrf.mxu0  ;;  %2086 = vperm.xlu0 %2575, %v206_v35  }
 0x3ca   :  { %v3850_v43 = vmul.f32 %v2010_v62, %v1808_v8  ;;  %v1979_v40 = vmul.f32 0.5, %v2835_v18  ;;  %v1919_v50 = vmul.f32 0.5, %v3845_v12  ;;  %v2439_v33 = vadd.f32 %v2438_v36, %v2437_v32 }
 0x3cb   :  { %v2440_v51 = vpop.f32.mrf.mxu0  ;;  %v2251_v8 = vcombine.high %v3853_v25, %v3853_v25 }
 0x3cc   :  { %2842 = vtanh.f32 %v1919_v50  ;;  %v1832_v29 = vadd.f32 %v2439_v33, %v3770_v54  ;;  %v2011_v11 = vadd.f32 0.5, %v1979_v40 }
 0x3cd   :  { %v2837_v6 = vpop.eup %2836  ;;  %v2441_v10 = vpop.f32.mrf.mxu0  ;;  %2128 = vmatprep.mubr.bf16.mxu1 %v2251_v8 }
 0x3ce   :  { %v1980_v19 = vmul.f32 0.5, %v2837_v6  ;;  %v1920_v61 = vmul.f32 0.5, %v1832_v29  ;;  %v2442_v3 = vadd.f32 %v2441_v10, %v2440_v51  ;;  %v3864_v46 = vmul.f32 %v2011_v11, %v3817_v41 }
 0x3cf   :  { %v2443_v47 = vpop.f32.mrf.mxu0 }
 0x3d0   :  { %v2012_v20 = vadd.f32 0.5, %v1980_v19  ;;  %2844 = vtanh.f32 %v1920_v61  ;;  %v3861_v2 = vadd.f32 %v2442_v3, %v3758_v1 }
 0x3d1   :  { %v2839_v54 = vpop.eup %2838  ;;  %v2444_v23 = vpop.f32.mrf.mxu0 }
 0x3d2   :  { %v3867_v63 = vmul.f32 %v2012_v20, %v3827_v37  ;;  %v1981_v22 = vmul.f32 0.5, %v2839_v54  ;;  %v1921_v44 = vmul.f32 0.5, %v3861_v2  ;;  %v2445_v15 = vadd.f32 %v2444_v23, %v2443_v47 }
 0x3d3   :  { %v2446_v32 = vpop.f32.mrf.mxu0 }
 0x3d4   :  { %2846 = vtanh.f32 %v1921_v44  ;;  %v1840_v62 = vadd.f32 %v2445_v15, %v3762_v9  ;;  %v2013_v36 = vadd.f32 0.5, %v1981_v22 }
 0x3d5   :  { %v2841_v18 = vpop.eup %2840  ;;  %v2447_v41 = vpop.f32.mrf.mxu0 }
 0x3d6   :  { %v1982_v40 = vmul.f32 0.5, %v2841_v18  ;;  %v1922_v50 = vmul.f32 0.5, %v1840_v62  ;;  %v2448_v33 = vadd.f32 %v2447_v41, %v2446_v32  ;;  %v3875_v10 = vmul.f32 %v2013_v36, %v3831_v45 }
 0x3d7   :  { %v2449_v51 = vpop.f32.mrf.mxu0 }
 0x3d8   :  { %v2014_v37 = vadd.f32 0.5, %v1982_v40  ;;  %2848 = vtanh.f32 %v1922_v50  ;;  %v1845_v6 = vadd.f32 %v2448_v33, %v3802_v56 }
 0x3d9   :  { %v2843_v11 = vpop.eup %2842  ;;  %v2450_v8 = vpop.f32.mrf.mxu0 }
 0x3da   :  { %v3878_v19 = vmul.f32 %v2014_v37, %v3841_v60  ;;  %v1983_v9 = vmul.f32 0.5, %v2843_v11  ;;  %v1923_v61 = vmul.f32 0.5, %v1845_v6  ;;  %v2451_v3 = vadd.f32 %v2450_v8, %v2449_v51 }
 0x3db   :  { %v2452_v35 = vpop.f32.mrf.mxu0 }
 0x3dc   :  { %2850 = vtanh.f32 %v1923_v61  ;;  %v1848_v20 = vadd.f32 %v2451_v3, %v3804_v5  ;;  %v2015_v56 = vadd.f32 0.5, %v1983_v9 }
 0x3dd   :  { %v2845_v4 = vpop.eup %2844  ;;  %v2453_v54 = vpop.f32.mrf.mxu0 }
 0x3de   :  { %v1984_v23 = vmul.f32 0.5, %v2845_v4  ;;  %v1924_v45 = vmul.f32 0.5, %v1848_v20  ;;  %v2454_v22 = vadd.f32 %v2453_v54, %v2452_v35  ;;  %v3885_v18 = vmul.f32 %v2015_v56, %v3845_v12 }
 0x3df   :  { %v2455_v44 = vpop.f32.mrf.mxu0 }
 0x3e0   :  { %v2016_v15 = vadd.f32 0.5, %v1984_v23  ;;  %2852 = vtanh.f32 %v1924_v45  ;;  %v1853_v60 = vadd.f32 %v2454_v22, %v3798_v38 }
 0x3e1   :  { %v2847_v32 = vpop.eup %2846  ;;  %v2456_v36 = vpop.f32.mrf.mxu0 }
 0x3e2   :  { %v3887_v41 = vmul.f32 %v2016_v15, %v1832_v29  ;;  %v1985_v40 = vmul.f32 0.5, %v2847_v32  ;;  %v1925_v5 = vmul.f32 0.5, %v1853_v60  ;;  %v2457_v50 = vadd.f32 %v2456_v36, %v2455_v44 }
 0x3e3   :  { %v3889_v33 = vpop.f32.mrf.mxu0 }
 0x3e4   :  { %2854 = vtanh.f32 %v1925_v5  ;;  %v1856_v37 = vadd.f32 %v2457_v50, %v3800_v26  ;;  %v2017_v8 = vadd.f32 0.5, %v1985_v40 }
 0x3e5   :  { %v2849_v11 = vpop.eup %2848  ;;  %v3894_v38 = vpop.f32.mrf.mxu0 }
 0x3e6   :  { %v1986_v12 = vmul.f32 0.5, %v2849_v11  ;;  %v1926_v9 = vmul.f32 0.5, %v1856_v37  ;;  %v3901_v4 = vmul.f32 %v2017_v8, %v3861_v2 }
 0x3e7   :  { %v3896_v61 = vpop.f32.mrf.mxu0 }
 0x3e8   :  { %v2018_v29 = vadd.f32 0.5, %v1986_v12  ;;  %2856 = vtanh.f32 %v1926_v9 }
 0x3e9   :  { %v2851_v3 = vpop.eup %2850  ;;  %v3898_v35 = vpop.f32.mrf.mxu0 }
 0x3ea   :  { %v3903_v56 = vmul.f32 %v2018_v29, %v1840_v62  ;;  %v1987_v54 = vmul.f32 0.5, %v2851_v3 }
 0x3eb   :  { %v2464_v26 = vpop.f32.mrf.mxu0 }
 0x3ec   :  { %v2019_v44 = vadd.f32 0.5, %v1987_v54 }
 0x3ed   :  { %v2853_v45 = vpop.eup %2852  ;;  %v2465_v22 = vpop.f32.mrf.mxu0 }
 0x3ee   :  { %v1988_v15 = vmul.f32 0.5, %v2853_v45  ;;  %v3907_v50 = vmul.f32 %v2019_v44, %v1845_v6 }
 0x3ef   :  { %v2467_v32 = vpop.f32.mrf.mxu0 }
 0x3f0   :  { %v2020_v36 = vadd.f32 0.5, %v1988_v15 }
 0x3f1   :  { %v2855_v40 = vpop.eup %2854  ;;  %v2468_v5 = vpop.f32.mrf.mxu0 }
 0x3f2   :  { %v3909_v11 = vmul.f32 %v2020_v36, %v1848_v20  ;;  %v1989_v2 = vmul.f32 0.5, %v2855_v40 }
 0x3f3   :  { %v2470_v62 = vpop.f32.mrf.mxu0 }
 0x3f4   :  { %v2021_v29 = vadd.f32 0.5, %v1989_v2 }
 0x3f5   :  { %v2857_v12 = vpop.eup %2856  ;;  %v2471_v9 = vpop.f32.mrf.mxu0 }
 0x3f6   :  { %v1990_v3 = vmul.f32 0.5, %v2857_v12  ;;  %v3913_v30 = vmul.f32 %v2021_v29, %v1853_v60 }
 0x3f7   :  { %v2473_v58 = vpop.f32.mrf.mxu0 }
 0x3f8   :  { %v2022_v54 = vadd.f32 0.5, %v1990_v3 }
 0x3f9   :  { %v2474_v45 = vpop.f32.mrf.mxu0 }
 0x3fa   :  { %v3915_v15 = vmul.f32 %v2022_v54, %v1856_v37  ;;  %v2475_v54 = vadd.f32 %v2474_v45, %v2473_v58 }
 0x3fb   :  { %v2476_v6 = vpop.f32.mrf.mxu0 }
 0x3fd   :  { %v2477_v44 = vpop.f32.mrf.mxu0 }
 0x3fe   :  { %v2478_v3 = vadd.f32 %v2477_v44, %v2476_v6  ;;  %v2469_v44 = vadd.f32 %v2468_v5, %v2467_v32 }
 0x3ff   :  { %v2479_v36 = vpop.f32.mrf.mxu0 }
 0x400   :  { %v3947_v5 = vadd.f32 %v2469_v44, %v3790_v57 }
 0x401   :  { %v2480_v40 = vpop.f32.mrf.mxu0 }
 0x402   :  { %v2481_v12 = vadd.f32 %v2480_v40, %v2479_v36 }
 0x403   :  { %v2482_v52 = vpop.f32.mrf.mxu0 }
 0x404   :  { %v3926_v51 = vadd.f32 %v2481_v12, %v3774_v27 }
 0x405   :  { %v2483_v8 = vpop.f32.mrf.mxu0 }
 0x406   :  { %v2484_v48 = vadd.f32 %v2483_v8, %v2482_v52  ;;  %v3930_v8 = vadd.f32 %v2478_v3, %v3772_v0  ;;  %v1934_v27 = vmul.f32 0.5, %v3926_v51  ;;  %v2466_v0 = vadd.f32 %v2465_v22, %v2464_v26 }
 0x407   :  { %v2485_v1 = vpop.f32.mrf.mxu0  ;;  %v2460_v26 = vadd.f32 %v3894_v38, %v3889_v33 }
 0x408   :  { %v3920_v60 = vadd.f32 %v2484_v48, %v3764_v7  ;;  %v2472_v7 = vadd.f32 %v2471_v9, %v2470_v62 }
 0x409   :  { %v2486_v2 = vpop.f32.mrf.mxu0  ;;  %v3960_v57 = vadd.f32 %v2460_v26, %v3794_v24 }
 0x40a   :  { %v2487_v47 = vadd.f32 %v2486_v2, %v2485_v1  ;;  %v1935_v1 = vmul.f32 0.5, %v3920_v60  ;;  %v3940_v36 = vadd.f32 %v2472_v7, %v3780_v17  ;;  %v3952_v17 = vadd.f32 %v2466_v0, %v3788_v14 }
 0x40b   :  { %v2488_v37 = vpop.f32.mrf.mxu0  ;;  %v1927_v62 = vmul.f32 0.5, %v3960_v57 }
 0x40c   :  { %v3923_v29 = vadd.f32 %v2487_v47, %v3766_v28  ;;  %v3935_v28 = vadd.f32 %v2475_v54, %v3782_v34  ;;  %v2463_v34 = vadd.f32 %v3898_v35, %v3896_v61  ;;  %v1931_v22 = vmul.f32 0.5, %v3940_v36 }
 0x40d   :  { %v2489_v20 = vpop.f32.mrf.mxu0  ;;  %v1930_v61 = vmul.f32 0.5, %v3947_v5  ;;  %v1929_v35 = vmul.f32 0.5, %v3952_v17 }
 0x40e   :  { %v1936_v23 = vmul.f32 0.5, %v3923_v29  ;;  %v2490_v52 = vadd.f32 %v2489_v20, %v2488_v37  ;;  %v1933_v20 = vmul.f32 0.5, %v3930_v8  ;;  %v1932_v32 = vmul.f32 0.5, %v3935_v28 }
 0x40f   :  { %v2491_v6 = vpop.f32.mrf.mxu0 }
 0x410   :  { %v1901_v48 = vadd.f32 %v2490_v52, %v3756_v21  ;;  %2858 = vtanh.f32 %v1936_v23 }
 0x411   :  { %v2492_v58 = vpop.f32.mrf.mxu0  ;;  %2860 = vtanh.f32 %v1935_v1 }
 0x412   :  { %v1937_v47 = vmul.f32 0.5, %v1901_v48  ;;  %v2493_v45 = vadd.f32 %v2492_v58, %v2491_v6 }
 0x414   :  { %2862 = vtanh.f32 %v1937_v47  ;;  %v1904_v21 = vadd.f32 %v2493_v45, %v3760_v16  ;;  %v3956_v16 = vadd.f32 %v2463_v34, %v3796_v55 }
 0x415   :  { %2864 = vtanh.f32 %v1934_v27 }
 0x416   :  { %v1938_v23 = vmul.f32 0.5, %v1904_v21  ;;  %2866 = vtanh.f32 %v1933_v20  ;;  %v1928_v33 = vmul.f32 0.5, %v3956_v16 }
 0x418   :  { %2868 = vtanh.f32 %v1938_v23 }
 0x419   :  { %2870 = vtanh.f32 %v1932_v32 }
 0x41a   :  { %2872 = vtanh.f32 %v1931_v22 }
 0x41b   :  { %2874 = vtanh.f32 %v1930_v61 }
 0x41c   :  { %2876 = vtanh.f32 %v1929_v35 }
 0x41d   :  { %v2859_v14 = vpop.eup %2858  ;;  %2878 = vtanh.f32 %v1928_v33 }
 0x41e   :  { %v2861_v38 = vpop.eup %2860  ;;  %v2000_v55 = vmul.f32 0.5, %v2859_v14  ;;  %2880 = vtanh.f32 %v1927_v62 }
 0x41f   :  { %v1999_v24 = vmul.f32 0.5, %v2861_v38 }
 0x420   :  { %v2032_v52 = vadd.f32 0.5, %v2000_v55  ;;  %v4061_v55 = vpack.c.bf16 %v3903_v56, %v3901_v4 }
 0x421   :  { %v2863_v9 = vpop.eup %2862  ;;  %v2031_v44 = vadd.f32 0.5, %v1999_v24 }
 0x422   :  { %v2001_v40 = vmul.f32 0.5, %v2863_v9  ;;  %v2865_v2 = vpop.eup %2864  ;;  %v2064_v20 = vmul.f32 %v2032_v52, %v3923_v29  ;;  %v4063_v52 = vpack.c.bf16 %v3878_v19, %v3875_v10  ;;  %v4066_v10 = vpack.c.bf16 %v3835_v42, %v3833_v39 }
 0x423   :  { %v2867_v12 = vpop.eup %2866  ;;  %v1998_v54 = vmul.f32 0.5, %v2865_v2  ;;  %v2063_v22 = vmul.f32 %v2031_v44, %v3920_v60  ;;  %v4067_v19 = vpack.c.bf16 %v3915_v15, %v3913_v30 }
 0x424   :  { %v2033_v1 = vadd.f32 0.5, %v2001_v40  ;;  %v1997_v7 = vmul.f32 0.5, %v2867_v12 }
 0x425   :  { %v2869_v3 = vpop.eup %2868  ;;  %v2030_v45 = vadd.f32 0.5, %v1998_v54  ;;  %v2082_v62 = vpack.c.bf16 %v2064_v20, %v2063_v22 }
 0x426   :  { %v2871_v37 = vpop.eup %2870  ;;  %v2002_v6 = vmul.f32 0.5, %v2869_v3  ;;  %v2065_v0 = vmul.f32 %v2033_v1, %v1901_v48  ;;  %v2029_v26 = vadd.f32 0.5, %v1997_v7  ;;  %v4065_v7 = vpack.c.bf16 %v3850_v43, %v3848_v31 }
 0x427   :  { %v2873_v27 = vpop.eup %2872  ;;  %v1996_v47 = vmul.f32 0.5, %v2871_v37  ;;  %v2062_v38 = vmul.f32 %v2030_v45, %v3926_v51  ;;  %v4062_v51 = vpack.c.bf16 %v3887_v41, %v3885_v18  ;;  %v2250_v31 = vcombine.low %v3853_v25, %v3853_v25 }
 0x428   :  { %v2034_v58 = vadd.f32 0.5, %v2002_v6  ;;  %v2875_v34 = vpop.eup %2874  ;;  %v1995_v23 = vmul.f32 0.5, %v2873_v27  ;;  %v4064_v6 = vpack.c.bf16 %v3867_v63, %v3864_v46  ;;  %v4068_v46 = vpack.c.bf16 %v3821_v53, %v3819_v13 }
 0x429   :  { %v2877_v35 = vpop.eup %2876  ;;  %v1994_v33 = vmul.f32 0.5, %v2875_v34  ;;  %v2028_v14 = vadd.f32 0.5, %v1996_v47  ;;  %v4069_v63 = vpack.c.bf16 %v3909_v11, %v3907_v50  ;;  %v4070_v43 = vpack.c.bf16 %v3810_v59, %v3808_v49 }
 0x42a   :  { %v2066_v32 = vmul.f32 %v2034_v58, %v1904_v21  ;;  %v2879_v9 = vpop.eup %2878  ;;  %v1993_v29 = vmul.f32 0.5, %v2877_v35  ;;  %v2027_v48 = vadd.f32 0.5, %v1995_v23  ;;  %v2061_v21 = vmul.f32 %v2029_v26, %v3930_v8 }
 0x42b   :  { %v2881_v40 = vpop.eup %2880  ;;  %v1992_v60 = vmul.f32 0.5, %v2879_v9  ;;  %v2026_v2 = vadd.f32 0.5, %v1994_v33  ;;  %v2060_v12 = vmul.f32 %v2028_v14, %v3935_v28 }
 0x42c   :  { %v2083_v61 = vpack.c.bf16 %v2066_v32, %v2065_v0  ;;  %v2081_v24 = vpack.c.bf16 %v2062_v38, %v2061_v21  ;;  %v1991_v3 = vmul.f32 0.5, %v2881_v40  ;;  %v2025_v37 = vadd.f32 0.5, %v1993_v29 }
 0x42d   :  { %v2059_v4 = vmul.f32 %v2027_v48, %v3940_v36  ;;  %v2024_v56 = vadd.f32 0.5, %v1992_v60  ;;  %v2058_v54 = vmul.f32 %v2026_v2, %v3947_v5 }
 0x42e   :  { %2494 = vmatprep.subr.bf16.mxu1 %v2083_v61  ;;  %v2023_v1 = vadd.f32 0.5, %v1991_v3  ;;  %v2057_v28 = vmul.f32 %v2025_v37, %v3952_v17 }
 0x42f   :  { %2495 = vmatpush3.bf16.msra.mxu1 %v4061_v55  ;;  %v2080_v8 = vpack.c.bf16 %v2060_v12, %v2059_v4  ;;  %v2056_v18 = vmul.f32 %v2024_v56, %v3956_v16 }
 0x430   :  { %2496 = vmatprep.subr.bf16.mxu1 %v2082_v62  ;;  %v2079_v41 = vpack.c.bf16 %v2058_v54, %v2057_v28  ;;  %v2055_v36 = vmul.f32 %v2023_v1, %v3960_v57 }
 0x432   :  { %v2078_v5 = vpack.c.bf16 %v2056_v18, %v2055_v36 }
 0x433   :  { %2497 = vmatpush3.bf16.msra.mxu1 %v4062_v51 }
 0x434   :  { %2498 = vmatprep.subr.bf16.mxu1 %v2081_v24 }
 0x437   :  { %2499 = vmatpush3.bf16.msra.mxu1 %v4063_v52 }
 0x438   :  { %2500 = vmatprep.subr.bf16.mxu1 %v2080_v8 }
 0x43b   :  { %2501 = vmatpush3.bf16.msra.mxu1 %v4064_v6 }
 0x43c   :  { %2502 = vmatprep.subr.bf16.mxu1 %v2079_v41 }
 0x43f   :  { %2503 = vmatpush3.bf16.msra.mxu1 %v4065_v7 }
 0x440   :  { %2504 = vmatprep.subr.bf16.mxu1 %v2078_v5 }
 0x443   :  { %2505 = vmatpush3.bf16.msra.mxu1 %v4066_v10 }
 0x444   :  { %2506 = vmatprep.subr.bf16.mxu1 %v4067_v19  ;;  %v2087_v30 = vpop.permute.xlu0 %2086 }
 0x447   :  { %2507 = vmatpush3.bf16.msra.mxu1 %v4068_v46 }
 0x448   :  { %2508 = vmatprep.subr.bf16.mxu1 %v4069_v63 }
 0x44b   :  { %2509 = vmatpush3.bf16.msra.mxu1 %v4070_v43 }
 0x44e   :  { %2129 = vmatmul.mubr.bf16.vlgmr.msra.gmra.mxu1 %v2250_v31 }
 0x50e   :  { %v2510_v39 = vpop.f32.mrf.mxu1 }
 0x510   :  { %v2511_v42 = vpop.f32.mrf.mxu1 }
 0x511   :  { %v2512_v15 = vadd.f32 %v2511_v42, %v2510_v39 }
 0x512   :  { %v2513_v13 = vpop.f32.mrf.mxu1 }
 0x513   :  { %v2131_v53 = vadd.f32 %v2512_v15, %v2087_v30 }
 0x514   :  { %v2514_v17 = vpop.f32.mrf.mxu1 }
 0x515   :  { %2136 = vst [vmem:[#allocation10] sm:$0xff] %v2131_v53 }
 0x516   :  { %3005 = shalt.err (!%p3002_p10)
}
 0x517   :  { %2146 = dma.vmem_to_hbm [thread:$0]  %s2144_s3, 128, %s4014_s4, [#allocation4]  }
 0x518   :  { %3020 = dma.done.wait [#allocation4], 128  }
 0x519   :  { %3021 = vsyncadd [#allocation4], 4294967168 }
 0x51a   :  { %2150 = vsyncpa [#allocation3], 1 }
 0x51b   :  { %2151 = vsyncpa [#allocation6], 1 }
 0x51c   :  { %2152 = vsyncpa [#allocation9], 1 }
 0x51d   :  { %2153 = vsyncpa [#allocation4], 1 }

</bundles_post_ra>
